<compile_context>
chip_gen: v5e
topology: v5e:2x2
jax: 0.10.0
libtpu: 0.0.40
codegen_flags: <defaults>
</compile_context>

<pallas_src>
import functools

import jax
import jax.numpy as jnp
from jax import lax
from jax.experimental import pallas as pl
from jax.experimental.pallas import tpu as pltpu


def _round_up(v, m):
    return ((v + m - 1) // m) * m


# ----------------------------------------------------------------------------
# Kernel: one (batch, row-tile) grid step.
#   xm_ref: (1, TH*s, Wsrc, Csrc)   rows [t*TH*s, (t+1)*TH*s) of the prepared input
#   xh_ref: (1, 2,    Wsrc, Csrc)   the 2 rows directly below the main block (halo)
#   w_ref : (3, 3*Cin_p, Cout_p)    BN-folded taps; K packs (dw, ci), dw-major
#   b_ref : (1, 1, Cout_p)          folded BN bias (f32)
#   o_ref : (1, TH, Wo, Cout_p)
# ----------------------------------------------------------------------------
def _conv3bn_kernel(xm_ref, xh_ref, w_ref, b_ref, o_ref, *, stride):
    s = stride
    _, th, wo, cout = o_ref.shape
    csrc = xm_ref.shape[-1]
    cin_p = csrc // 2 if s == 2 else csrc
    k = w_ref.shape[1]
    assert k == 3 * cin_p

    # Tile rows incl. the 2-row bottom halo (one cheap major-axis concat).
    x_all = jnp.concatenate([xm_ref[0], xh_ref[0]], axis=0)      # (TH*s + 2, Wsrc, Csrc)

    # K-pack the three dw taps along the channel (lane) axis once, so the conv
    # reduces to 3 MXU matmuls with K = 3*Cin_p and only 3 accumulator RMW passes.
    parts = []
    for dw in range(3):
        if s == 1:
            parts.append(x_all[:, dw:dw + wo, :])
        else:  # s == 2: column parity was packed into channels on the host
            ph, off = dw % 2, dw // 2
            parts.append(x_all[:, off:off + wo, ph * cin_p:(ph + 1) * cin_p])
    xk = jnp.concatenate(parts, axis=-1)                          # (TH*s + 2, Wo, 3*Cin_p)

    # Three accumulated matmuls (one per dh).  3-D dot_general keeps the
    # (rows, Wo, C) shape throughout -- no reshape across the (8,128) tile.
    dnums = (((2,), (0,)), ((), ()))
    acc = jnp.zeros((th, wo, cout), jnp.float32)
    if s == 1:
        for dh in range(3):
            acc = acc + lax.dot_general(xk[dh:dh + th], w_ref[dh], dnums,
                                        preferred_element_type=jnp.float32)
    else:  # s == 2: row parity via a free leading-dim reshape (no strided loads)
        xk4 = xk.reshape(th + 1, 2, wo, k)
        for dh in range(3):
            lhs = xk4[dh // 2:dh // 2 + th, dh % 2]
            acc = acc + lax.dot_general(lhs, w_ref[dh], dnums,
                                        preferred_element_type=jnp.float32)

    # Folded-BN bias + h_swish (x * relu6(x + 3) / 6), all f32 on the VPU.
    z = acc + b_ref[...]
    z = z * (jnp.clip(z + 3.0, 0.0, 6.0) * (1.0 / 6.0))
    o_ref[0] = z.astype(o_ref.dtype)


# ----------------------------------------------------------------------------
# Host-side parameter folding: Conv weight + eval-mode BN -> packed weights, bias
# ----------------------------------------------------------------------------
def fold_conv3bn_params(w_oihw, gamma, beta, mean, var, *, eps=1e-5,
                        compute_dtype=jnp.bfloat16):
    cout, cin, kh, kw = w_oihw.shape
    assert (kh, kw) == (3, 3)
    scale = gamma / jnp.sqrt(var + eps)                           # (Cout,)
    bias = beta - mean * scale                                    # (Cout,)

    cin_p = _round_up(cin, 128)
    cout_p = _round_up(cout, 128)

    # (O, I, 3, 3) -> (dh, dw, I, O), fold BN scale, pad channels to lane multiples,
    # then pack (dw, I) into the matmul K dimension (dw-major).
    w = jnp.transpose(w_oihw * scale[:, None, None, None], (2, 3, 1, 0))   # (3,3,I,O)
    w = jnp.pad(w, ((0, 0), (0, 0), (0, cin_p - cin), (0, cout_p - cout)))
    w = w.reshape(3, 3 * cin_p, cout_p).astype(compute_dtype)

    bias = jnp.pad(bias, (0, cout_p - cout)).astype(jnp.float32).reshape(1, 1, cout_p)
    return w, bias, cin_p, cout_p


def _pick_row_tile(ho, stride, src_cols, src_chan, bpe, target_bytes=1 << 20):
    """Output-row tile so the input block is ~target_bytes (0.5-2 MiB sweet spot)."""
    row_bytes = max(1, stride * src_cols * src_chan * bpe)
    th = target_bytes // row_bytes
    th = max(8, (th // 8) * 8)                 # multiple of 8 (=> even, halo-index exact)
    # Prefer >=2 row tiles (keeps both v7x TensorCores busy at N == 1) and never
    # exceed the rounded-up number of output rows.
    th = min(th, max(8, _round_up((ho + 1) // 2, 8)), _round_up(ho, 8))
    return int(th)


# ----------------------------------------------------------------------------
# Forward wrappers
# ----------------------------------------------------------------------------
def conv3bn_forward_nhwc(x_nhwc, w_oihw, gamma, beta, mean, var, *,
                         stride=1, eps=1e-5, use_bf16=True, out_dtype=None):
    """x_nhwc: (N, H, W, Cin).  Returns (N, Ho, Wo, Cout) in out_dtype.

    In a fully-NHWC model, keep channel-padded activations between layers so the
    final [..., :cout] slice (and any NCHW transposes) disappear.
    """
    assert stride in (1, 2)
    compute_dtype = jnp.bfloat16 if use_bf16 else jnp.float32
    if out_dtype is None:
        out_dtype = compute_dtype                     # bf16 output halves writeback

    w3, bias, cin_p, cout_p = fold_conv3bn_params(
        w_oihw, gamma, beta, mean, var, eps=eps, compute_dtype=compute_dtype)

    N, H, W, C = x_nhwc.shape
    cout, cin = w_oihw.shape[0], w_oihw.shape[1]
    assert C == cin
    s = stride
    Ho = (H - 1) // s + 1
    Wo = (W - 1) // s + 1

    if s == 1:
        wsrc, csrc = W + 2, cin_p
    else:
        wsrc, csrc = _round_up(W + 2, 2) // 2, 2 * cin_p

    bpe = jnp.dtype(compute_dtype).itemsize
    th = _pick_row_tile(Ho, s, wsrc, csrc, bpe)
    ho_p = _round_up(Ho, th)
    n_tiles = ho_p // th
    hp_pad = ho_p * s + 2                            # prepared-input rows
    hs = (th * s) // 2                               # halo block index step

    # Host prep: cast first (halves pad bandwidth), then a single pad doing the
    # conv zero-padding, extra bottom rows for whole tiles and channel lane-padding.
    x = x_nhwc.astype(compute_dtype)
    col_pad_hi = 1 + (_round_up(W + 2, 2) - (W + 2) if s == 2 else 0)
    x = jnp.pad(x, ((0, 0), (1, hp_pad - H - 1), (1, col_pad_hi), (0, cin_p - C)))
    if s == 2:
        # Pack column parity into channels: (..., 2*w2 + p, ci) -> (..., w2, p*Cin_p + ci)
        x = x.reshape(N, hp_pad, wsrc, csrc)

    # Generation-aware VMEM budget (review: ~36 MiB cap on 64-MiB v7x, more on v5e/v6e).
    out_bpe = jnp.dtype(out_dtype).itemsize
    in_main = th * s * wsrc * csrc * bpe
    in_halo = 2 * wsrc * csrc * bpe
    w_bytes = 3 * 3 * cin_p * cout_p * bpe
    out_blk = th * Wo * cout_p * out_bpe
    interm = ((th * s + 2) * wsrc * csrc * bpe            # x_all
              + (th * s + 2) * Wo * 3 * cin_p * bpe       # K-packed lhs
              + 2 * th * Wo * cout_p * 4)                 # acc + epilogue temps
    need = 2 * (in_main + in_halo + out_blk + w_bytes) + 3 * cout_p * 4 + interm
    cap = 128 << 20
    try:
        cap = int(pltpu.get_tpu_info().vmem_capacity_bytes)
    except Exception:
        pass
    ceiling = (36 << 20) if cap <= (64 << 20) else (96 << 20)
    vmem_limit = int(min(max(need + (8 << 20), 24 << 20), ceiling))

    kernel = functools.partial(_conv3bn_kernel, stride=s)

    out = pl.pallas_call(
        kernel,
        out_shape=jax.ShapeDtypeStruct((N, ho_p, Wo, cout_p), out_dtype),
        grid_spec=pltpu.PrefetchScalarGridSpec(
            num_scalar_prefetch=0,
            grid=(N, n_tiles),
            in_specs=[
                pl.BlockSpec((1, th * s, wsrc, csrc), lambda n, t: (n, t, 0, 0)),
                pl.BlockSpec((1, 2, wsrc, csrc), lambda n, t: (n, (t + 1) * hs, 0, 0)),
                pl.BlockSpec(w3.shape, lambda n, t: (0, 0, 0)),      # resident weights
                pl.BlockSpec(bias.shape, lambda n, t: (0, 0, 0)),    # resident bias
            ],
            out_specs=pl.BlockSpec((1, th, Wo, cout_p), lambda n, t: (n, t, 0, 0)),
        ),
        compiler_params=pltpu.CompilerParams(
            dimension_semantics=("parallel", "parallel"),
            vmem_limit_bytes=vmem_limit),
    )(x, x, w3, bias)

    return out[:, :Ho, :, :cout]                     # drop row / lane padding


def conv3bn_forward(x_nchw, w_oihw, gamma, beta, mean, var, *,
                    stride=1, eps=1e-5, use_bf16=True, out_dtype=None):
    """NCHW wrapper for PyTorch parity (the two transposes are separate XLA ops)."""
    x_nhwc = jnp.transpose(x_nchw, (0, 2, 3, 1))
    out = conv3bn_forward_nhwc(x_nhwc, w_oihw, gamma, beta, mean, var,
                               stride=stride, eps=eps, use_bf16=use_bf16,
                               out_dtype=out_dtype)
    return jnp.transpose(out, (0, 3, 1, 2))


# ----------------------------------------------------------------------------
# Pure-JAX reference (true module semantics, f32 everywhere)
# ----------------------------------------------------------------------------
def conv3bn_reference(x_nchw, w_oihw, gamma, beta, mean, var, *, stride=1, eps=1e-5):
    y = lax.conv_general_dilated(
        x_nchw, w_oihw, window_strides=(stride, stride),
        padding=((1, 1), (1, 1)),
        dimension_numbers=('NCHW', 'OIHW', 'NCHW'))
    scale = (gamma / jnp.sqrt(var + eps))[None, :, None, None]
    bias = (beta - mean * gamma / jnp.sqrt(var + eps))[None, :, None, None]
    y = y * scale + bias
    return y * (jnp.clip(y + 3.0, 0.0, 6.0) / 6.0)            # h_swish


# ----------------------------------------------------------------------------
if __name__ == "__main__":
    key = jax.random.PRNGKey(0)
    kx, kw, kg, kb, km, kv = jax.random.split(key, 6)

    N, Cin, H, W = 2, 4, 16, 16
    Cout = 8

    x = jax.random.normal(kx, (N, Cin, H, W), jnp.float32)
    w = jax.random.normal(kw, (Cout, Cin, 3, 3), jnp.float32) / jnp.sqrt(Cin * 9)
    gamma = jax.random.uniform(kg, (Cout,), jnp.float32, 0.5, 1.5)
    beta = 0.1 * jax.random.normal(kb, (Cout,), jnp.float32)
    mean = 0.1 * jax.random.normal(km, (Cout,), jnp.float32)
    var = jax.random.uniform(kv, (Cout,), jnp.float32, 0.5, 1.5)

    for stride in (1, 2):
        ref = conv3bn_reference(x, w, gamma, beta, mean, var, stride=stride)

        # f32 MXU path (f32 output): tight tolerance.
        out_f32 = jax.block_until_ready(
            conv3bn_forward(x, w, gamma, beta, mean, var,
                            stride=stride, use_bf16=False))
        assert out_f32.shape == ref.shape, (stride, out_f32.shape, ref.shape)
        assert jnp.allclose(out_f32, ref, atol=1e-4, rtol=1e-4), \
            (stride, "f32", float(jnp.max(jnp.abs(out_f32 - ref))))

        # bf16 operands + bf16 output (f32 accumulation / epilogue): looser tolerance.
        out_bf16 = jax.block_until_ready(
            conv3bn_forward(x, w, gamma, beta, mean, var,
                            stride=stride, use_bf16=True))
        assert out_bf16.shape == ref.shape, (stride, out_bf16.shape, ref.shape)
        assert jnp.allclose(out_bf16.astype(jnp.float32), ref, atol=1e-1, rtol=1e-1), \
            (stride, "bf16", float(jnp.max(jnp.abs(out_bf16.astype(jnp.float32) - ref))))

    print("KERNEL_OK")
</pallas_src>

<mosaic_0001>
module attributes {stable_mosaic.version = 11 : i64} {
  func.func @_conv3bn_kernel(%arg0: i32, %arg1: i32, %arg2: memref<1x8x18x128xf32, #tpu.memory_space<vmem>>, %arg3: memref<1x2x18x128xf32, #tpu.memory_space<vmem>>, %arg4: memref<3x384x128xf32, #tpu.memory_space<vmem>>, %arg5: memref<1x1x128xf32, #tpu.memory_space<vmem>>, %arg6: memref<1x8x16x128xf32, #tpu.memory_space<vmem>>) attributes {dimension_semantics = [#tpu.dimension_semantics<parallel>, #tpu.dimension_semantics<parallel>], iteration_bounds = array<i64: 2, 2>, scalar_prefetch = 0 : i64, scratch_operands = 0 : i64, tpu.core_type = #tpu.core_type<tc>, window_params = [{transform_indices = @transform_0, window_bounds = array<i64: 1, 8, 18, 128>}, {transform_indices = @transform_1, window_bounds = array<i64: 1, 2, 18, 128>}, {pipeline_mode = #tpu.pipeline_mode<synchronous>, transform_indices = @transform_2, window_bounds = array<i64: 3, 384, 128>}, {pipeline_mode = #tpu.pipeline_mode<synchronous>, transform_indices = @transform_3, window_bounds = array<i64: 1, 1, 128>}, {transform_indices = @transform_4, window_bounds = array<i64: 1, 8, 16, 128>}]} {
    %c0 = arith.constant 0 : index
    %c0_0 = arith.constant 0 : index
    %c0_1 = arith.constant 0 : index
    %c0_2 = arith.constant 0 : index
    %0 = vector.load %arg2[%c0, %c0_0, %c0_1, %c0_2] : memref<1x8x18x128xf32, #tpu.memory_space<vmem>>, vector<1x8x18x128xf32>
    %1 = vector.shape_cast %0 : vector<1x8x18x128xf32> to vector<8x18x128xf32>
    %c0_3 = arith.constant 0 : index
    %c0_4 = arith.constant 0 : index
    %c0_5 = arith.constant 0 : index
    %c0_6 = arith.constant 0 : index
    %2 = vector.load %arg3[%c0_3, %c0_4, %c0_5, %c0_6] : memref<1x2x18x128xf32, #tpu.memory_space<vmem>>, vector<1x2x18x128xf32>
    %3 = vector.shape_cast %2 : vector<1x2x18x128xf32> to vector<2x18x128xf32>
    %4 = tpu.concatenate %1, %3 in 0 : vector<8x18x128xf32>, vector<2x18x128xf32> -> vector<10x18x128xf32>
    %5 = vector.extract_strided_slice %4 {offsets = [0, 0, 0], sizes = [10, 16, 128], strides = [1, 1, 1]} : vector<10x18x128xf32> to vector<10x16x128xf32>
    %6 = vector.extract_strided_slice %4 {offsets = [0, 1, 0], sizes = [10, 16, 128], strides = [1, 1, 1]} : vector<10x18x128xf32> to vector<10x16x128xf32>
    %7 = vector.extract_strided_slice %4 {offsets = [0, 2, 0], sizes = [10, 16, 128], strides = [1, 1, 1]} : vector<10x18x128xf32> to vector<10x16x128xf32>
    %8 = tpu.concatenate %5, %6, %7 in 2 : vector<10x16x128xf32>, vector<10x16x128xf32>, vector<10x16x128xf32> -> vector<10x16x384xf32>
    %cst = arith.constant 0.000000e+00 : f32
    %9 = vector.broadcast %cst : f32 to vector<8x16x128xf32>
    %10 = vector.extract_strided_slice %8 {offsets = [0, 0, 0], sizes = [8, 16, 384], strides = [1, 1, 1]} : vector<10x16x384xf32> to vector<8x16x384xf32>
    %c0_7 = arith.constant 0 : index
    %c0_8 = arith.constant 0 : index
    %c0_9 = arith.constant 0 : index
    %11 = vector.load %arg4[%c0_7, %c0_8, %c0_9] : memref<3x384x128xf32, #tpu.memory_space<vmem>>, vector<1x384x128xf32>
    %12 = vector.shape_cast %11 : vector<1x384x128xf32> to vector<384x128xf32>
    %cst_10 = arith.constant dense<0.000000e+00> : vector<8x16x128xf32>
    %13 = tpu.matmul %10, %12, %cst_10 {dimension_numbers = #tpu.dot_dimension_numbers<[2], [0], [0, 1], [1], [0, 0, 0, 1, 1, 1], [], []>} : vector<8x16x384xf32>, vector<384x128xf32>, vector<8x16x128xf32> -> vector<8x16x128xf32>
    %14 = arith.addf %9, %13 : vector<8x16x128xf32>
    %15 = vector.extract_strided_slice %8 {offsets = [1, 0, 0], sizes = [8, 16, 384], strides = [1, 1, 1]} : vector<10x16x384xf32> to vector<8x16x384xf32>
    %c1 = arith.constant 1 : index
    %c0_11 = arith.constant 0 : index
    %c0_12 = arith.constant 0 : index
    %16 = vector.load %arg4[%c1, %c0_11, %c0_12] : memref<3x384x128xf32, #tpu.memory_space<vmem>>, vector<1x384x128xf32>
    %17 = vector.shape_cast %16 : vector<1x384x128xf32> to vector<384x128xf32>
    %cst_13 = arith.constant dense<0.000000e+00> : vector<8x16x128xf32>
    %18 = tpu.matmul %15, %17, %cst_13 {dimension_numbers = #tpu.dot_dimension_numbers<[2], [0], [0, 1], [1], [0, 0, 0, 1, 1, 1], [], []>} : vector<8x16x384xf32>, vector<384x128xf32>, vector<8x16x128xf32> -> vector<8x16x128xf32>
    %19 = arith.addf %14, %18 : vector<8x16x128xf32>
    %20 = vector.extract_strided_slice %8 {offsets = [2, 0, 0], sizes = [8, 16, 384], strides = [1, 1, 1]} : vector<10x16x384xf32> to vector<8x16x384xf32>
    %c2 = arith.constant 2 : index
    %c0_14 = arith.constant 0 : index
    %c0_15 = arith.constant 0 : index
    %21 = vector.load %arg4[%c2, %c0_14, %c0_15] : memref<3x384x128xf32, #tpu.memory_space<vmem>>, vector<1x384x128xf32>
    %22 = vector.shape_cast %21 : vector<1x384x128xf32> to vector<384x128xf32>
    %cst_16 = arith.constant dense<0.000000e+00> : vector<8x16x128xf32>
    %23 = tpu.matmul %20, %22, %cst_16 {dimension_numbers = #tpu.dot_dimension_numbers<[2], [0], [0, 1], [1], [0, 0, 0, 1, 1, 1], [], []>} : vector<8x16x384xf32>, vector<384x128xf32>, vector<8x16x128xf32> -> vector<8x16x128xf32>
    %24 = arith.addf %19, %23 : vector<8x16x128xf32>
    %c0_17 = arith.constant 0 : index
    %c0_18 = arith.constant 0 : index
    %c0_19 = arith.constant 0 : index
    %25 = vector.load %arg5[%c0_17, %c0_18, %c0_19] : memref<1x1x128xf32, #tpu.memory_space<vmem>>, vector<1x1x128xf32>
    %26 = vector.broadcast %25 : vector<1x1x128xf32> to vector<8x16x128xf32>
    %27 = arith.addf %24, %26 : vector<8x16x128xf32>
    %cst_20 = arith.constant 3.000000e+00 : f32
    %28 = vector.broadcast %cst_20 : f32 to vector<8x16x128xf32>
    %29 = arith.addf %27, %28 : vector<8x16x128xf32>
    %cst_21 = arith.constant 0.000000e+00 : f32
    %cst_22 = arith.constant 6.000000e+00 : f32
    %30 = vector.broadcast %cst_21 : f32 to vector<8x16x128xf32>
    %31 = arith.maximumf %30, %29 : vector<8x16x128xf32>
    %32 = vector.broadcast %cst_22 : f32 to vector<8x16x128xf32>
    %33 = arith.minimumf %32, %31 : vector<8x16x128xf32>
    %cst_23 = arith.constant 0.166666672 : f32
    %34 = vector.broadcast %cst_23 : f32 to vector<8x16x128xf32>
    %35 = arith.mulf %33, %34 : vector<8x16x128xf32>
    %36 = arith.mulf %27, %35 : vector<8x16x128xf32>
    %c0_24 = arith.constant 0 : index
    %c0_25 = arith.constant 0 : index
    %c0_26 = arith.constant 0 : index
    %c0_27 = arith.constant 0 : index
    %37 = vector.load %arg6[%c0_24, %c0_25, %c0_26, %c0_27] : memref<1x8x16x128xf32, #tpu.memory_space<vmem>>, vector<1x8x16x128xf32>
    %38 = vector.shape_cast %37 : vector<1x8x16x128xf32> to vector<8x16x128xf32>
    %39 = vector.shape_cast %36 : vector<8x16x128xf32> to vector<1x8x16x128xf32>
    tpu.vector_store %arg6[%c0_24, %c0_25, %c0_26, %c0_27], %39 {strides = array<i32>} : memref<1x8x16x128xf32, #tpu.memory_space<vmem>>, vector<1x8x16x128xf32>,
    return
  }
  func.func @transform_0(%arg0: i32, %arg1: i32) -> (i32, i32, i32, i32) {
    %c0_i32 = arith.constant 0 : i32
    %c0_i32_0 = arith.constant 0 : i32
    %c0_i32_1 = arith.constant 0 : i32
    return %arg0, %arg1, %c0_i32, %c0_i32_0 : i32, i32, i32, i32
  }
  func.func @transform_1(%arg0: i32, %arg1: i32) -> (i32, i32, i32, i32) {
    %c1_i32 = arith.constant 1 : i32
    %0 = arith.addi %arg1, %c1_i32 : i32
    %c4_i32 = arith.constant 4 : i32
    %1 = arith.muli %0, %c4_i32 : i32
    %c0_i32 = arith.constant 0 : i32
    %c0_i32_0 = arith.constant 0 : i32
    %c0_i32_1 = arith.constant 0 : i32
    return %arg0, %1, %c0_i32, %c0_i32_0 : i32, i32, i32, i32
  }
  func.func @transform_2(%arg0: i32, %arg1: i32) -> (i32, i32, i32) {
    %c0_i32 = arith.constant 0 : i32
    %c0_i32_0 = arith.constant 0 : i32
    %c0_i32_1 = arith.constant 0 : i32
    %c0_i32_2 = arith.constant 0 : i32
    return %c0_i32, %c0_i32_0, %c0_i32_1 : i32, i32, i32
  }
  func.func @transform_3(%arg0: i32, %arg1: i32) -> (i32, i32, i32) {
    %c0_i32 = arith.constant 0 : i32
    %c0_i32_0 = arith.constant 0 : i32
    %c0_i32_1 = arith.constant 0 : i32
    %c0_i32_2 = arith.constant 0 : i32
    return %c0_i32, %c0_i32_0, %c0_i32_1 : i32, i32, i32
  }
  func.func @transform_4(%arg0: i32, %arg1: i32) -> (i32, i32, i32, i32) {
    %c0_i32 = arith.constant 0 : i32
    %c0_i32_0 = arith.constant 0 : i32
    %c0_i32_1 = arith.constant 0 : i32
    return %arg0, %arg1, %c0_i32, %c0_i32_0 : i32, i32, i32, i32
  }
}

</mosaic_0001>

<bundles_post_ra>
// kernel: tpu_custom_call.1
= control target key start
LH: loop header
LB: loop body
LE: loop exit
PB: predicated region body
PF: predicated region fallthrough
CT: control target
= control target key end

     0   :  { %9 = vsyncpa [#allocation3], 0  ;;  %s2958_s0 = inlined_call_operand.vmem [shape: f32[2,18,18,128], index: 0, kind: input, shape index: {}]   ;;  %s2959_s1 = inlined_call_operand.vmem [shape: f32[2,18,18,128], index: 1, kind: input, shape index: {}]   ;;  %s2960_s2 = inlined_call_operand.vmem [shape: f32[3,384,128], index: 2, kind: input, shape index: {}]   ;;  %s2961_s3 = inlined_call_operand.vmem [shape: f32[1,1,128], index: 3, kind: input, shape index: {}]   ;;  %s2962_s4 = inlined_call_operand.hbm [shape: f32[2,16,16,128], index: 4, kind: output, shape index: {}]  }
   0x1   :  { %11 = vsyncpa [#allocation3 + $0x1], 0  ;;  %s1877_s15 = smov 0   ;;  %s1879_s16 = smov 0  }
   0x2   :  { %s1881_s17 = smov 0   ;;  %s1883_s18 = smov 0  }
   0x3   :  { %s1885_s19 = smov 0   ;;  %s1887_s20 = smov 0  }
   0x4   :  { %s1889_s21 = smov 0   ;;  %s1891_s22 = smov 0  }
   0x5 LB: > { %s1498_s23 = sadd.s32 4294967295, %s1848_s22   ;;  %s1499_s24 = sadd.s32 4294967294, %s1848_s22   ;;  %s1848_s22 = sphi %s1891_s22, %s17_s22   ;;  %s1844_s21 = sphi %s1889_s21, %s2983_s21   ;;  %s1840_s20 = sphi %s1887_s20, %s2982_s20   ;;  %s1836_s19 = sphi %s1885_s19, %s2981_s19   ;;  %s1832_s18 = sphi %s1883_s18, %s2980_s18   ;;  %s1828_s17 = sphi %s1881_s17, %s2979_s17   ;;  %s1824_s16 = sphi %s1879_s16, %s2978_s16   ;;  %s1820_s15 = sphi %s1877_s15, %s2977_s15  }
   0x6   : > { %s26_s25 = sadd.s32 1, %s1840_s20  ;;  %s29_s26 = sadd.s32 1, %s1844_s21 }
   0x7   : > { %p27_p0 = scmp.ge.s32.totalorder %s26_s25, 2  ;;  %p150_p1 = scmp.ne.s32.totalorder %s1828_s17, %s1824_s16 }
   0x8   : > { %p151_p2 = scmp.eq.s32.totalorder %s1498_s23, 3  ;;  %p156_p5 = scmp.ne.s32.totalorder %s1824_s16, %s1820_s15 }
   0x9   : > { %s2985_s25 = smov (%p27_p0, %s26_s25), 0  ;;  %s2987_s26 = smov (!%p27_p0, %s29_s26), %s1844_s21 }
   0xa   : > { %s136_s27 = ssub.s32 %s1840_s20, %s2985_s25  ;;  %p1928_p3 = por %p151_p2, %p150_p1 }
   0xb   : > { %p31_p4 = scmp.ge.s32.totalorder %s2987_s26, 2  ;;  %p157_p6 = scmp.eq.s32.totalorder %s1499_s24, 3 }
   0xc   : > { %p1504_p7 = scmp.ge.s32.totalorder %s1848_s22, 1  ;;  %p223_p9 = scmp.lt.s32.totalorder %s1848_s22, 5 }
   0xd   : > { %s2989_s26 = smov (%p31_p4, %s2987_s26), 0  ;;  %p1937_p8 = por %p157_p6, %p156_p5 }
   0xe   : > { %s135_s30 = ssub.s32 %s1844_s21, %s2989_s26  ;;  %s140_s5 = sadd.s32 1, %s1828_s17 }
   0xf   : > { %s137_s6 = sor.u32 %s136_s27, %s135_s30  ;;  %p224_p10 = pnand %p1504_p7, %p223_p9 }
  0x10   : > { %p138_p11 = scmp.eq.s32.totalorder %s137_s6, 0 }
  0x11   : > { %227 = sbr.rel (%p224_p10) target bundleno = 496 (0x1f0), region = 36 }
  0x12   : > { %s1946_s7 = scalar_select %p138_p11, %s1828_s17, %s140_s5  }
  0x16   : > { %v1526_v0 = vld [vmem:[%s2960_s2 + $0x1f8] sm:$0xff]  ;;  %v1525_v1 = vld [vmem:[%s2960_s2 + $0x1f0] sm:$0xff]  ;;  %v1524_v2 = vld [vmem:[%s2960_s2 + $0x1e8] sm:$0xff]  ;;  %s1961_s24 = sshll.u32 %s1832_s18, 3  ;;  %p277_p12 = scmp.lt.s32.totalorder %s1836_s19, 1  ;;  %vm368_vm0 = vcmask 1046528  }
  0x17   : > { %1624 = vmatpush.msra.mxu1 %v1526_v0  ;;  %1625 = vmatpush.msra.mxu2 %v1526_v0  ;;  %v1523_v3 = vld [vmem:[%s2960_s2 + $0x1e0] sm:$0xff]  ;;  %v1522_v4 = vld [vmem:[%s2960_s2 + $0x1d8] sm:$0xff]  ;;  %v1521_v5 = vld [vmem:[%s2960_s2 + $0x1d0] sm:$0xff]  ;;  %p279_p13 = scmp.lt.s32.totalorder %s1961_s24, 17  ;;  %vm439_vm1 = vcmask 1045504   ;;  %s1610_s5 = sshll.u32 %s1836_s19, 5 }
  0x18   : > { %1626 = vmatpush.msra.mxu3 %v1526_v0  ;;  %607 = vmatpush.msra.mxu0 %v1526_v0  ;;  %v1520_v6 = vld [vmem:[%s2960_s2 + $0x1c8] sm:$0xff]  ;;  %s1975_s10 = scalar_select %p277_p12, %s1836_s19, 1  ;;  %v1519_v7 = vld [vmem:[%s2960_s2 + $0x1c0] sm:$0xff]  ;;  %v1518_v8 = vld [vmem:[%s2960_s2 + $0x1b8] sm:$0xff] }
  0x19   : > { %1627 = vmatpush.msra.mxu1 %v1525_v1  ;;  %1628 = vmatpush.msra.mxu2 %v1525_v1  ;;  %s280_s13 = scalar_select %p279_p13, %s1961_s24, 17  ;;  %v1517_v9 = vld [vmem:[%s2960_s2 + $0x1b0] sm:$0xff]  ;;  %v1516_v10 = vld [vmem:[%s2960_s2 + $0x1a8] sm:$0xff]  ;;  %v1515_v11 = vld [vmem:[%s2960_s2 + $0x1a0] sm:$0xff] }
  0x1a   : > { %1629 = vmatpush.msra.mxu3 %v1525_v1  ;;  %608 = vmatpush.msra.mxu0 %v1525_v1  ;;  %s1673_s27 = smul.u32 54, %s1975_s10  ;;  %v1514_v12 = vld [vmem:[%s2960_s2 + $0x198] sm:$0xff]  ;;  %v1513_v13 = vld [vmem:[%s2960_s2 + $0x190] sm:$0xff]  ;;  %v1512_v14 = vld [vmem:[%s2960_s2 + $0x188] sm:$0xff] }
  0x1b   : > { %1630 = vmatpush.msra.mxu1 %v1524_v2  ;;  %1631 = vmatpush.msra.mxu2 %v1524_v2  ;;  %s1672_s6 = smul.u32 3, %s280_s13  ;;  %v1511_v15 = vld [vmem:[%s2960_s2 + $0x180] sm:$0xff]  ;;  %v1558_v19 = vld [vmem:[%s2960_s2 + $0x2f8] sm:$0xff]  ;;  %v1557_v22 = vld [vmem:[%s2960_s2 + $0x2f0] sm:$0xff]  ;;  %s1621_s13 = sshll.u32 %s1832_s18, 4 }
  0x1c   : > { %1632 = vmatpush.msra.mxu3 %v1524_v2  ;;  %609 = vmatpush.msra.mxu0 %v1524_v2  ;;  %v525_v20 = vld [vmem:[%s2960_s2 + $0x78] sm:$0xff]  ;;  %v524_v23 = vld [vmem:[%s2960_s2 + $0x70] sm:$0xff]  ;;  %v1556_v26 = vld [vmem:[%s2960_s2 + $0x2e8] sm:$0xff] }
  0x1d   : > { %1633 = vmatpush.msra.mxu1 %v1523_v3  ;;  %1634 = vmatpush.msra.mxu2 %v1523_v3  ;;  %s283_s14 = sadd.s32 %s1673_s27, %s1672_s6  ;;  %s1623_s6 = sadd.s32 8, %s1961_s24  ;;  %v1542_v21 = vld [vmem:[%s2960_s2 + $0x278] sm:$0xff]  ;;  %v1541_v24 = vld [vmem:[%s2960_s2 + $0x270] sm:$0xff]  ;;  %v523_v27 = vld [vmem:[%s2960_s2 + $0x68] sm:$0xff] }
  0x1e   : > { %1635 = vmatpush.msra.mxu3 %v1523_v3  ;;  %610 = vmatpush.msra.mxu0 %v1523_v3  ;;  %s1507_s30 = sshll.u32 %s283_s14, 3  ;;  %p2014_p0 = scmp.lt.s32.totalorder %s1623_s6, 17  ;;  %v1540_v28 = vld [vmem:[%s2960_s2 + $0x268] sm:$0xff]  ;;  %v541_v29 = vld [vmem:[%s2960_s2 + $0xf8] sm:$0xff]  ;;  %v1555_v30 = vld [vmem:[%s2960_s2 + $0x2e0] sm:$0xff] }
  0x1f   : > { %1636 = vmatpush.msra.mxu1 %v1522_v4  ;;  %1637 = vmatpush.msra.mxu2 %v1522_v4  ;;  %s2009_s23 = scalar_lea.vmem %s2958_s0, %s1507_s30  ;;  %v522_v31 = vld [vmem:[%s2960_s2 + $0x60] sm:$0xff]  ;;  %v1554_v36 = vld [vmem:[%s2960_s2 + $0x2d8] sm:$0xff]  ;;  %v540_v39 = vld [vmem:[%s2960_s2 + $0xf0] sm:$0xff]  ;;  %s1386_s30 = sadd.s32 %s1621_s13, %s1610_s5 }
  0x20   : > { %1638 = vmatpush.msra.mxu3 %v1522_v4  ;;  %611 = vmatpush.msra.mxu0 %v1522_v4  ;;  %v2019_v16 = vld [vmem:[%s2009_s23 + $0x48] sm:$0xff]  ;;  %v2022_v17 = vld [vmem:[%s2009_s23 + $0x78] sm:$0xff]  ;;  %s2991_s6 = smov (!%p2014_p0, %s1623_s6), 17  ;;  %v1539_v32 = vld [vmem:[%s2960_s2 + $0x260] sm:$0xff]  ;;  %s1774_s5 = scalar_lea.hbm %s2962_s4, 512 }
  0x21   : > { %1639 = vmatpush.msra.mxu1 %v1521_v5  ;;  %1640 = vmatpush.msra.mxu2 %v1521_v5  ;;  %v2025_v18 = vld [vmem:[%s2009_s23 + $0xa8] sm:$0xff]  ;;  %v2053_v25 = vld [vmem:[%s2009_s23 + $0x18] sm:$0xff]  ;;  %s1674_s11 = smul.u32 3, %s2991_s6  ;;  %v2079_v33 = vld [vmem:[%s2009_s23 + $0x80] sm:$0xff]  ;;  %s1611_s6 = sshll.u32 %s1386_s30, 3 }
  0x22   : > { %1641 = vmatpush.msra.mxu3 %v1521_v5  ;;  %612 = vmatpush.msra.mxu0 %v1521_v5  ;;  %v2082_v34 = vld [vmem:[%s2009_s23 + $0x50] sm:$0xff]  ;;  %v521_v37 = vld [vmem:[%s2960_s2 + $0x58] sm:$0xff]  ;;  %v539_v43 = vld [vmem:[%s2960_s2 + $0xe8] sm:$0xff]  ;;  %s1388_s10 = scalar_lea.hbm %s2962_s4, %s1611_s6 }
  0x23   : > { %1642 = vmatpush.msra.mxu1 %v1520_v6  ;;  %1643 = vmatpush.msra.mxu2 %v1520_v6  ;;  %v2085_v35 = vld [vmem:[%s2009_s23 + $0xb0] sm:$0xff]  ;;  %s301_s12 = sadd.s32 %s1674_s11, %s1673_s27  ;;  %v1538_v38 = vld [vmem:[%s2960_s2 + $0x258] sm:$0xff]  ;;  %v1552_v44 = vld [vmem:[%s2960_s2 + $0x2c8] sm:$0xff]  ;;  %s268_s11 = sand.u32 1, %s1824_s16  }
  0x24   : > { %1644 = vmatpush.msra.mxu3 %v1520_v6  ;;  %613 = vmatpush.msra.mxu0 %v1520_v6  ;;  %v1553_v40 = vld [vmem:[%s2960_s2 + $0x2d0] sm:$0xff]  ;;  %s1510_s14 = sshll.u32 %s301_s12, 3  ;;  %v519_v45 = vld [vmem:[%s2960_s2 + $0x48] sm:$0xff]  ;;  %v538_v47 = vld [vmem:[%s2960_s2 + $0xe0] sm:$0xff]  ;;  %s1505_s9 = sshll.u32 %s268_s11, 7 }
  0x25   : > { %1645 = vmatpush.msra.mxu1 %v1519_v7  ;;  %1646 = vmatpush.msra.mxu2 %v1519_v7  ;;  %v520_v41 = vld [vmem:[%s2960_s2 + $0x50] sm:$0xff]  ;;  %v1536_v46 = vld [vmem:[%s2960_s2 + $0x248] sm:$0xff]  ;;  %v1551_v48 = vld [vmem:[%s2960_s2 + $0x2c0] sm:$0xff]  ;;  %s2137_s8 = scalar_lea.vmem %s2959_s1, %s1510_s14  ;;  %s2862_s24 = scalar_lea.vmem [#allocation2], %s1505_s9 }
  0x26   : > { %1647 = vmatpush.msra.mxu3 %v1519_v7  ;;  %614 = vmatpush.msra.mxu0 %v1519_v7  ;;  %v1537_v42 = vld [vmem:[%s2960_s2 + $0x250] sm:$0xff]  ;;  %v518_v49 = vld [vmem:[%s2960_s2 + $0x40] sm:$0xff]  ;;  %v1550_v55 = vld [vmem:[%s2960_s2 + $0x2b8] sm:$0xff]  ;;  %s1389_s27 = sshll.u32 %s2862_s24, 4  ;;  %s1391_s14 = sshll.u32 %s1388_s10, 4  ;;  %s1390_s27 = int_to_ptr.vmem [resolvable:$true] %s1389_s27  ;;  %s1392_s14 = int_to_ptr.hbm [resolvable:$true] %s1391_s14 }
  0x27   : > { %1648 = vmatpush.msra.mxu1 %v1518_v8  ;;  %1649 = vmatpush.msra.mxu2 %v1518_v8  ;;  %v1535_v50 = vld [vmem:[%s2960_s2 + $0x240] sm:$0xff]  ;;  %v2149_v53 = vld [vmem:[%s2009_s23 + $0x90] sm:$0xff]  ;;  %v517_v56 = vld [vmem:[%s2960_s2 + $0x38] sm:$0xff]  ;;  %s1374_s12 = scalar_lea.sflag [#allocation3], %s268_s11 }
  0x28   : > { %1650 = vmatpush.msra.mxu3 %v1518_v8  ;;  %615 = vmatpush.msra.mxu0 %v1518_v8  ;;  %v2143_v51 = vld [vmem:[%s2009_s23 + $0x20] sm:$0xff]  ;;  %v537_v57 = vld [vmem:[%s2960_s2 + $0xd8] sm:$0xff]  ;;  %v1549_v59 = vld [vmem:[%s2960_s2 + $0x2b0] sm:$0xff] }
  0x29   : > { %1651 = vmatpush.msra.mxu1 %v1517_v9  ;;  %1652 = vmatpush.msra.mxu2 %v1517_v9  ;;  %v2146_v52 = vld [vmem:[%s2009_s23 + $0x60] sm:$0xff]  ;;  %v1534_v58 = vld [vmem:[%s2960_s2 + $0x238] sm:$0xff]  ;;  %v516_v60 = vld [vmem:[%s2960_s2 + $0x30] sm:$0xff] }
  0x2a   : > { %1653 = vmatpush.msra.mxu3 %v1517_v9  ;;  %616 = vmatpush.msra.mxu0 %v1517_v9  ;;  %v2152_v54 = vld [vmem:[%s2137_s8] sm:$0xff]  ;;  %v536_v61 = vld [vmem:[%s2960_s2 + $0xd0] sm:$0xff]  ;;  %v1548_v63 = vld [vmem:[%s2960_s2 + $0x2a8] sm:$0xff] }
  0x2b   : > { %1654 = vmatpush.msra.mxu1 %v1516_v10  ;;  %1655 = vmatpush.msra.mxu2 %v1516_v10  ;;  %v1533_v62 = vld [vmem:[%s2960_s2 + $0x230] sm:$0xff]  ;;  %v515_v0 = vld [vmem:[%s2960_s2 + $0x28] sm:$0xff]  ;;  %v1547_v3 = vld [vmem:[%s2960_s2 + $0x2a0] sm:$0xff] }
  0x2c   : > { %1656 = vmatpush.msra.mxu3 %v1516_v10  ;;  %617 = vmatpush.msra.mxu0 %v1516_v10  ;;  %v535_v1 = vld [vmem:[%s2960_s2 + $0xc8] sm:$0xff]  ;;  %v514_v4 = vld [vmem:[%s2960_s2 + $0x20] sm:$0xff]  ;;  %v2207_v7 = vld [vmem:[%s2009_s23 + $0x30] sm:$0xff] }
  0x2d   : > { %1657 = vmatpush.msra.mxu1 %v1515_v11  ;;  %1658 = vmatpush.msra.mxu2 %v1515_v11  ;;  %v1532_v2 = vld [vmem:[%s2960_s2 + $0x228] sm:$0xff]  ;;  %v534_v5 = vld [vmem:[%s2960_s2 + $0xc0] sm:$0xff]  ;;  %v2213_v9 = vld [vmem:[%s2009_s23 + $0x98] sm:$0xff] }
  0x2e   : > { %1659 = vmatpush.msra.mxu3 %v1515_v11  ;;  %618 = vmatpush.msra.mxu0 %v1515_v11  ;;  %v1531_v6 = vld [vmem:[%s2960_s2 + $0x220] sm:$0xff]  ;;  %v2210_v8 = vld [vmem:[%s2009_s23 + $0x68] sm:$0xff]  ;;  %v1546_v11 = vld [vmem:[%s2960_s2 + $0x298] sm:$0xff] }
  0x2f   : > { %1660 = vmatpush.msra.mxu1 %v1514_v12  ;;  %1661 = vmatpush.msra.mxu2 %v1514_v12  ;;  %v2216_v10 = vld [vmem:[%s2137_s8 + $0x8] sm:$0xff] }
  0x30   : > { %1662 = vmatpush.msra.mxu3 %v1514_v12  ;;  %619 = vmatpush.msra.mxu0 %v1514_v12  ;;  %v513_v12 = vld [vmem:[%s2960_s2 + $0x18] sm:$0xff] }
  0x31   : > { %1663 = vmatpush.msra.mxu1 %v1513_v13  ;;  %1664 = vmatpush.msra.mxu2 %v1513_v13 }
  0x32   : > { %1665 = vmatpush.msra.mxu3 %v1513_v13  ;;  %620 = vmatpush.msra.mxu0 %v1513_v13  ;;  %v533_v13 = vld [vmem:[%s2960_s2 + $0xb8] sm:$0xff] }
  0x33   : > { %1666 = vmatpush.msra.mxu1 %v1512_v14  ;;  %1667 = vmatpush.msra.mxu2 %v1512_v14 }
  0x34   : > { %1668 = vmatpush.msra.mxu3 %v1512_v14  ;;  %621 = vmatpush.msra.mxu0 %v1512_v14  ;;  %v1530_v14 = vld [vmem:[%s2960_s2 + $0x218] sm:$0xff] }
  0x35   : > { %1669 = vmatpush.msra.mxu1 %v1511_v15  ;;  %1670 = vmatpush.msra.mxu2 %v1511_v15 }
  0x36   : > { %1671 = vmatpush.msra.mxu3 %v1511_v15  ;;  %635 = vmatmul.f32.vlgmr.msra.gmra.mxu1 %v2019_v16 }
  0x37   : > { %647 = vmatmul.f32.vlgmr.msra.gmra.mxu2 %v2022_v17  ;;  %659 = vmatmul.f32.vlgmr.msra.gmra.mxu3 %v2025_v18 }
  0x38   : > { %737 = vmatpush.msrb.mxu2 %v1558_v19  ;;  %802 = vmatpush.msrb.mxu3 %v525_v20  ;;  %v512_v19 = vld [vmem:[%s2960_s2 + $0x10] sm:$0xff] }
  0x39   : > { %672 = vmatpush.msrb.mxu1 %v1542_v21  ;;  %622 = vmatpush.msra.mxu0 %v1511_v15  ;;  %v1545_v15 = vld [vmem:[%s2960_s2 + $0x290] sm:$0xff] }
  0x3a   : > { %738 = vmatpush.msrb.mxu2 %v1557_v22  ;;  %803 = vmatpush.msrb.mxu3 %v524_v23  ;;  %v532_v20 = vld [vmem:[%s2960_s2 + $0xb0] sm:$0xff]  ;;  %v1544_v22 = vld [vmem:[%s2960_s2 + $0x288] sm:$0xff] }
  0x3b   : > { %673 = vmatpush.msrb.mxu1 %v1541_v24  ;;  %623 = vmatmul.f32.vlgmr.msra.gmra.mxu0 %v2053_v25  ;;  %v1529_v21 = vld [vmem:[%s2960_s2 + $0x210] sm:$0xff]  ;;  %v511_v23 = vld [vmem:[%s2960_s2 + $0x8] sm:$0xff] }
  0x3c   : > { %739 = vmatpush.msrb.mxu2 %v1556_v26  ;;  %804 = vmatpush.msrb.mxu3 %v523_v27  ;;  %v531_v24 = vld [vmem:[%s2960_s2 + $0xa8] sm:$0xff]  ;;  %v374_v26 = vrot.slane %v2053_v25, 1  ;;  %v375_v27 = vrot.slane %v2143_v51, 1 }
  0x3d   : > { %674 = vmatpush.msrb.mxu1 %v1540_v28  ;;  %867 = vmatpush.msrb.mxu0 %v541_v29  ;;  %v445_v28 = vrot.slane %v2053_v25, 2  ;;  %v446_v29 = vrot.slane %v2143_v51, 2 }
  0x3e   : > { %740 = vmatpush.msrb.mxu2 %v1555_v30  ;;  %805 = vmatpush.msrb.mxu3 %v522_v31  ;;  %v1528_v30 = vld [vmem:[%s2960_s2 + $0x208] sm:$0xff]  ;;  %v1543_v31 = vld [vmem:[%s2960_s2 + $0x280] sm:$0xff] }
  0x3f   : > { %675 = vmatpush.msrb.mxu1 %v1539_v32  ;;  %650 = vmatmul.f32.gmra.mxu2 %v2079_v33  ;;  %v510_v32 = vld [vmem:[%s2960_s2] sm:$0xff] }
  0x40   : > { %638 = vmatmul.f32.gmra.mxu1 %v2082_v34  ;;  %662 = vmatmul.f32.gmra.mxu3 %v2085_v35 }
  0x41   : > { %741 = vmatpush.msrb.mxu2 %v1554_v36  ;;  %806 = vmatpush.msrb.mxu3 %v521_v37  ;;  %v530_v36 = vld [vmem:[%s2960_s2 + $0xa0] sm:$0xff] }
  0x42   : > { %676 = vmatpush.msrb.mxu1 %v1538_v38  ;;  %868 = vmatpush.msrb.mxu0 %v540_v39  ;;  %v1527_v37 = vld [vmem:[%s2960_s2 + $0x200] sm:$0xff]  ;;  %v2275_v38 = vld [vmem:[%s2009_s23 + $0x38] sm:$0xff]  ;;  %v2278_v39 = vsel %vm368_vm0, %v374_v26, %v375_v27  ;;  %v1604_v26 = vld [vmem:[%s2960_s2 + $0x468] sm:$0xff] }
  0x43   : > { %742 = vmatpush.msrb.mxu2 %v1553_v40  ;;  %807 = vmatpush.msrb.mxu3 %v520_v41  ;;  %v2281_v40 = vsel %vm439_vm1, %v445_v28, %v446_v29  ;;  %v2284_v41 = vld [vmem:[%s2009_s23] sm:$0xff]  ;;  %v1585_v28 = vld [vmem:[%s2960_s2 + $0x3d0] sm:$0xff] }
  0x44   : > { %677 = vmatpush.msrb.mxu1 %v1537_v42  ;;  %869 = vmatpush.msrb.mxu0 %v539_v43  ;;  %v529_v42 = vld [vmem:[%s2960_s2 + $0x98] sm:$0xff]  ;;  %v313_v43 = vld [vmem:[%s2009_s23 + $0x28] sm:$0x3] }
  0x45   : > { %743 = vmatpush.msrb.mxu2 %v1552_v44  ;;  %808 = vmatpush.msrb.mxu3 %v519_v45  ;;  %v1574_v44 = vld [vmem:[%s2960_s2 + $0x378] sm:$0xff] }
  0x46   : > { %678 = vmatpush.msrb.mxu1 %v1536_v46  ;;  %870 = vmatpush.msrb.mxu0 %v538_v47  ;;  %v1590_v45 = vld [vmem:[%s2960_s2 + $0x3f8] sm:$0xff]  ;;  %v2298_v46 = vld [vmem:[%s2009_s23 + $0x8] sm:$0xff]  ;;  %v528_v47 = vld [vmem:[%s2960_s2 + $0x90] sm:$0xff] }
  0x47   : > { %744 = vmatpush.msrb.mxu2 %v1551_v48  ;;  %809 = vmatpush.msrb.mxu3 %v518_v49  ;;  %v557_v48 = vld [vmem:[%s2960_s2 + $0x178] sm:$0xff]  ;;  %v377_v49 = vrot.slane %v313_v43, 1 }
  0x48   : > { %679 = vmatpush.msrb.mxu1 %v1535_v50  ;;  %626 = vmatmul.f32.gmra.mxu0 %v2143_v51  ;;  %v448_v50 = vrot.slane %v313_v43, 2 }
  0x49   : > { %641 = vmatmul.f32.gmra.mxu1 %v2146_v52  ;;  %653 = vmatmul.f32.gmra.mxu2 %v2149_v53 }
  0x4a   : > { %665 = vmatmul.f32.gmra.mxu3 %v2152_v54  ;;  %745 = vmatpush.msrb.mxu2 %v1550_v55  ;;  %v1573_v55 = vld [vmem:[%s2960_s2 + $0x370] sm:$0xff] }
  0x4b   : > { %810 = vmatpush.msrb.mxu3 %v517_v56  ;;  %871 = vmatpush.msrb.mxu0 %v537_v57  ;;  %v1589_v56 = vld [vmem:[%s2960_s2 + $0x3f0] sm:$0xff]  ;;  %v369_v57 = vrot.slane %v2284_v41, 1 }
  0x4c   : > { %680 = vmatpush.msrb.mxu1 %v1534_v58  ;;  %746 = vmatpush.msrb.mxu2 %v1549_v59  ;;  %v527_v58 = vld [vmem:[%s2960_s2 + $0x88] sm:$0xff]  ;;  %v370_v59 = vrot.slane %v2298_v46, 1 }
  0x4d   : > { %811 = vmatpush.msrb.mxu3 %v516_v60  ;;  %872 = vmatpush.msrb.mxu0 %v536_v61  ;;  %v556_v60 = vld [vmem:[%s2960_s2 + $0x170] sm:$0xff]  ;;  %v1572_v61 = vld [vmem:[%s2960_s2 + $0x368] sm:$0xff] }
  0x4e   : > { %681 = vmatpush.msrb.mxu1 %v1533_v62  ;;  %747 = vmatpush.msrb.mxu2 %v1548_v63  ;;  %v1588_v62 = vld [vmem:[%s2960_s2 + $0x3e8] sm:$0xff]  ;;  %v526_v63 = vld [vmem:[%s2960_s2 + $0x80] sm:$0xff] }
  0x4f   : > { %812 = vmatpush.msrb.mxu3 %v515_v0  ;;  %873 = vmatpush.msrb.mxu0 %v535_v1  ;;  %v555_v0 = vld [vmem:[%s2960_s2 + $0x168] sm:$0xff]  ;;  %v2336_v1 = vsel %vm368_vm0, %v375_v27, %v377_v49  ;;  %v1569_v27 = vld [vmem:[%s2960_s2 + $0x350] sm:$0xff] }
  0x50   : > { %682 = vmatpush.msrb.mxu1 %v1532_v2  ;;  %748 = vmatpush.msrb.mxu2 %v1547_v3  ;;  %v2339_v2 = vsel %vm439_vm1, %v446_v29, %v448_v50  ;;  %v371_v3 = vsel %vm368_vm0, %v369_v57, %v370_v59  ;;  %v384_v50 = vrot.slane %v2019_v16, 1  ;;  %v456_v57 = vrot.slane %v2082_v34, 2 }
  0x51   : > { %813 = vmatpush.msrb.mxu3 %v514_v4  ;;  %874 = vmatpush.msrb.mxu0 %v534_v5  ;;  %v1606_v4 = vld [vmem:[%s2960_s2 + $0x478] sm:$0xff]  ;;  %v2346_v5 = vld [vmem:[%s2009_s23 + $0x10] sm:$0x3] }
  0x52   : > { %683 = vmatpush.msrb.mxu1 %v1531_v6  ;;  %629 = vmatmul.f32.gmra.mxu0 %v2207_v7  ;;  %v1571_v6 = vld [vmem:[%s2960_s2 + $0x360] sm:$0xff] }
  0x53   : > { %644 = vmatmul.f32.gmra.mxu1 %v2210_v8  ;;  %656 = vmatmul.f32.gmra.mxu2 %v2213_v9 }
  0x54   : > { %668 = vmatmul.f32.gmra.mxu3 %v2216_v10  ;;  %749 = vmatpush.msrb.mxu2 %v1546_v11  ;;  %v1587_v11 = vld [vmem:[%s2960_s2 + $0x3e0] sm:$0xff] }
  0x55   : > { %814 = vmatpush.msrb.mxu3 %v513_v12  ;;  %875 = vmatpush.msrb.mxu0 %v533_v13  ;;  %v554_v12 = vld [vmem:[%s2960_s2 + $0x160] sm:$0xff]  ;;  %v379_v13 = vrot.slane %v2207_v7, 1 }
  0x56   : > { %684 = vmatpush.msrb.mxu1 %v1530_v14  ;;  %750 = vmatpush.msrb.mxu2 %v1545_v15  ;;  %v380_v14 = vrot.slane %v2275_v38, 1  ;;  %v450_v15 = vrot.slane %v2207_v7, 2 }
  0x57   : > { %815 = vmatpush.msrb.mxu3 %v512_v19  ;;  %876 = vmatpush.msrb.mxu0 %v532_v20  ;;  %v451_v19 = vrot.slane %v2275_v38, 2  ;;  %v1605_v20 = vld [vmem:[%s2960_s2 + $0x470] sm:$0xff] }
  0x58   : > { %685 = vmatpush.msrb.mxu1 %v1529_v21  ;;  %751 = vmatpush.msrb.mxu2 %v1544_v22  ;;  %v1570_v21 = vld [vmem:[%s2960_s2 + $0x358] sm:$0xff]  ;;  %v372_v22 = vrot.slane %v2346_v5, 1  ;;  %v2387_v29 = vsel %vm368_vm0, %v379_v13, %v380_v14  ;;  %v389_v13 = vrot.slane %v2146_v52, 1 }
  0x59   : > { %816 = vmatpush.msrb.mxu3 %v511_v23  ;;  %877 = vmatpush.msrb.mxu0 %v531_v24  ;;  %v1586_v23 = vld [vmem:[%s2960_s2 + $0x3d8] sm:$0xff] }
  0x5a   : > { %686 = vmatpush.msrb.mxu1 %v1528_v30  ;;  %752 = vmatpush.msrb.mxu2 %v1543_v31  ;;  %v553_v24 = vld [vmem:[%s2960_s2 + $0x158] sm:$0xff]  ;;  %v2390_v30 = vsel %vm439_vm1, %v450_v15, %v451_v19  ;;  %v373_v31 = vsel %vm368_vm0, %v370_v59, %v372_v22  ;;  %v1567_v59 = vld [vmem:[%s2960_s2 + $0x340] sm:$0xff]  ;;  %v460_v15 = vrot.slane %v2146_v52, 2  ;;  %v1581_v22 = vld [vmem:[%s2960_s2 + $0x3b0] sm:$0xff] }
  0x5b   : > { %817 = vmatpush.msrb.mxu3 %v510_v32  ;;  %878 = vmatpush.msrb.mxu0 %v530_v36  ;;  %v316_v32 = vld [vmem:[%s2009_s23 + $0x40] sm:$0x3] }
  0x5c   : > { %687 = vmatpush.msrb.mxu1 %v1527_v37  ;;  %632 = vmatmul.f32.gmra.mxu0 %v2275_v38  ;;  %v1603_v36 = vld [vmem:[%s2960_s2 + $0x460] sm:$0xff]  ;;  %v1602_v37 = vld [vmem:[%s2960_s2 + $0x458] sm:$0xff]  ;;  %v453_v43 = vrot.slane %v316_v32, 2 }
  0x5d   : > { %688 = vmatmul.f32.vlgmr.msrb.gmra.mxu1 %v2278_v39  ;;  %753 = vmatmul.f32.vlgmr.msrb.gmra.mxu2 %v2281_v40 }
  0x5e   : > { %818 = vmatmul.f32.vlgmr.msrb.gmra.mxu3 %v2284_v41  ;;  %879 = vmatpush.msrb.mxu0 %v529_v42  ;;  %v382_v42 = vrot.slane %v316_v32, 1  ;;  %v2419_v49 = vsel %vm439_vm1, %v451_v19, %v453_v43  ;;  %v461_v19 = vrot.slane %v2210_v8, 2  ;;  %v548_v32 = vld [vmem:[%s2960_s2 + $0x130] sm:$0xff] }
  0x5f   : > { %1046 = vmatpush.msra.mxu2 %v1574_v44  ;;  %1111 = vmatpush.msra.mxu3 %v1590_v45  ;;  %v552_v44 = vld [vmem:[%s2960_s2 + $0x150] sm:$0xff]  ;;  %v1568_v45 = vld [vmem:[%s2960_s2 + $0x348] sm:$0xff] }
  0x60   : > { %880 = vmatpush.msrb.mxu0 %v528_v47  ;;  %932 = vmatpush.msra.mxu1 %v557_v48  ;;  %v1584_v47 = vld [vmem:[%s2960_s2 + $0x3c8] sm:$0xff]  ;;  %v2416_v48 = vsel %vm368_vm0, %v380_v14, %v382_v42  ;;  %v390_v14 = vrot.slane %v2210_v8, 1  ;;  %v1597_v42 = vld [vmem:[%s2960_s2 + $0x430] sm:$0xff] }
  0x61   : > { %1047 = vmatpush.msra.mxu2 %v1573_v55  ;;  %1112 = vmatpush.msra.mxu3 %v1589_v56  ;;  %v385_v55 = vrot.slane %v2082_v34, 1  ;;  %v455_v56 = vrot.slane %v2019_v16, 2 }
  0x62   : > { %881 = vmatpush.msrb.mxu0 %v527_v58  ;;  %933 = vmatpush.msra.mxu1 %v556_v60  ;;  %v551_v58 = vld [vmem:[%s2960_s2 + $0x148] sm:$0xff] }
  0x63   : > { %1048 = vmatpush.msra.mxu2 %v1572_v61  ;;  %1113 = vmatpush.msra.mxu3 %v1588_v62  ;;  %v2442_v60 = vsel %vm368_vm0, %v384_v50, %v385_v55  ;;  %v2445_v61 = vsel %vm439_vm1, %v455_v56, %v456_v57  ;;  %v319_v62 = vld [vmem:[%s2009_s23 + $0x58] sm:$0x3]  ;;  %v466_v50 = vrot.slane %v2079_v33, 2  ;;  %v1563_v56 = vld [vmem:[%s2960_s2 + $0x320] sm:$0xff] }
  0x64   : > { %882 = vmatpush.msrb.mxu0 %v526_v63  ;;  %934 = vmatpush.msra.mxu1 %v555_v0  ;;  %v387_v63 = vrot.slane %v319_v62, 1  ;;  %v458_v0 = vrot.slane %v319_v62, 2 }
  0x65   : > { %691 = vmatmul.f32.gmra.mxu1 %v2336_v1  ;;  %756 = vmatmul.f32.gmra.mxu2 %v2339_v2 }
  0x66   : > { %821 = vmatmul.f32.gmra.mxu3 %v2298_v46  ;;  %883 = vmatmul.f32.vlgmr.msrb.gmra.mxu0 %v371_v3  ;;  %v550_v3 = vld [vmem:[%s2960_s2 + $0x140] sm:$0xff] }
  0x67   : > { %1176 = vmatpush.msra.mxu0 %v1606_v4  ;;  %1049 = vmatpush.msra.mxu2 %v1571_v6  ;;  %v1566_v4 = vld [vmem:[%s2960_s2 + $0x338] sm:$0xff] }
  0x68   : > { %1114 = vmatpush.msra.mxu3 %v1587_v11  ;;  %935 = vmatpush.msra.mxu1 %v554_v12  ;;  %v1582_v6 = vld [vmem:[%s2960_s2 + $0x3b8] sm:$0xff]  ;;  %v2465_v11 = vsel %vm368_vm0, %v385_v55, %v387_v63  ;;  %v2468_v12 = vsel %vm439_vm1, %v456_v57, %v458_v0  ;;  %v547_v55 = vld [vmem:[%s2960_s2 + $0x128] sm:$0xff]  ;;  %v1579_v57 = vld [vmem:[%s2960_s2 + $0x3a0] sm:$0xff] }
  0x69   : > { %1177 = vmatpush.msra.mxu0 %v1605_v20  ;;  %1050 = vmatpush.msra.mxu2 %v1570_v21  ;;  %v549_v20 = vld [vmem:[%s2960_s2 + $0x138] sm:$0xff]  ;;  %v1565_v21 = vld [vmem:[%s2960_s2 + $0x330] sm:$0xff]  ;;  %v546_v0 = vld [vmem:[%s2960_s2 + $0x120] sm:$0xff] }
  0x6a   : > { %1115 = vmatpush.msra.mxu3 %v1586_v23  ;;  %936 = vmatpush.msra.mxu1 %v553_v24  ;;  %v1598_v23 = vld [vmem:[%s2960_s2 + $0x438] sm:$0xff]  ;;  %v2491_v24 = vsel %vm368_vm0, %v389_v13, %v390_v14 }
  0x6b   : > { %1178 = vmatpush.msra.mxu0 %v1604_v26  ;;  %1051 = vmatpush.msra.mxu2 %v1569_v27  ;;  %v2494_v26 = vsel %vm439_vm1, %v460_v15, %v461_v19  ;;  %v322_v27 = vld [vmem:[%s2009_s23 + $0x70] sm:$0x3]  ;;  %v400_v15 = vrot.slane %v2213_v9, 1 }
  0x6c   : > { %1116 = vmatpush.msra.mxu3 %v1585_v28  ;;  %937 = vmatpush.msra.mxu1 %v552_v44  ;;  %v392_v28 = vrot.slane %v322_v27, 1 }
  0x6d   : > { %694 = vmatmul.f32.gmra.mxu1 %v2387_v29  ;;  %759 = vmatmul.f32.gmra.mxu2 %v2390_v30 }
  0x6e   : > { %824 = vmatmul.f32.gmra.mxu3 %v2053_v25  ;;  %886 = vmatmul.f32.gmra.mxu0 %v373_v31  ;;  %v1601_v25 = vld [vmem:[%s2960_s2 + $0x450] sm:$0xff]  ;;  %v463_v31 = vrot.slane %v322_v27, 2  ;;  %v2514_v43 = vsel %vm368_vm0, %v390_v14, %v392_v28  ;;  %v399_v14 = vrot.slane %v2149_v53, 1  ;;  %v1594_v27 = vld [vmem:[%s2960_s2 + $0x418] sm:$0xff] }
  0x6f   : > { %1179 = vmatpush.msra.mxu0 %v1603_v36  ;;  %1052 = vmatpush.msra.mxu2 %v1568_v45  ;;  %v1564_v36 = vld [vmem:[%s2960_s2 + $0x328] sm:$0xff]  ;;  %v394_v45 = vrot.slane %v2022_v17, 1 }
  0x70   : > { %1117 = vmatpush.msra.mxu3 %v1584_v47  ;;  %938 = vmatpush.msra.mxu1 %v551_v58  ;;  %v2517_v44 = vsel %vm439_vm1, %v461_v19, %v463_v31  ;;  %v395_v47 = vrot.slane %v2079_v33, 1  ;;  %v1596_v58 = vld [vmem:[%s2960_s2 + $0x428] sm:$0xff]  ;;  %v470_v19 = vrot.slane %v2149_v53, 2  ;;  %v2589_v28 = vsel %vm368_vm0, %v399_v14, %v400_v15 }
  0x71   : > { %1180 = vmatpush.msra.mxu0 %v1602_v37  ;;  %1053 = vmatpush.msra.mxu2 %v1567_v59  ;;  %v1580_v37 = vld [vmem:[%s2960_s2 + $0x3a8] sm:$0xff] }
  0x72   : > { %939 = vmatpush.msra.mxu1 %v550_v3  ;;  %v2540_v59 = vsel %vm368_vm0, %v394_v45, %v395_v47  ;;  %v1562_v3 = vld [vmem:[%s2960_s2 + $0x318] sm:$0xff]  ;;  %v1560_v45 = vld [vmem:[%s2960_s2 + $0x308] sm:$0xff] }
  0x73   : > { %1181 = vmatpush.msra.mxu0 %v1601_v25  ;;  %1054 = vmatpush.msra.mxu2 %v1566_v4  ;;  %v465_v25 = vrot.slane %v2022_v17, 2  ;;  %v1578_v4 = vld [vmem:[%s2960_s2 + $0x398] sm:$0xff] }
  0x74   : > { %940 = vmatpush.msra.mxu1 %v549_v20  ;;  %v471_v20 = vrot.slane %v2213_v9, 2 }
  0x75   : > { %697 = vmatmul.f32.gmra.mxu1 %v2416_v48  ;;  %762 = vmatmul.f32.gmra.mxu2 %v2419_v49 }
  0x76   : > { %827 = vmatmul.f32.gmra.mxu3 %v2143_v51  ;;  %889 = vmatmul.f32.gmra.mxu0 %v2278_v39  ;;  %v1583_v51 = vld [vmem:[%s2960_s2 + $0x3c0] sm:$0xff]  ;;  %v1600_v39 = vld [vmem:[%s2960_s2 + $0x448] sm:$0xff]  ;;  %v2592_v31 = vsel %vm439_vm1, %v470_v19, %v471_v20 }
  0x77   : > { %1118 = vmatpush.msra.mxu3 %v1583_v51  ;;  %1182 = vmatpush.msra.mxu0 %v1600_v39  ;;  %v2543_v51 = vsel %vm439_vm1, %v465_v25, %v466_v50  ;;  %v325_v39 = vld [vmem:[%s2009_s23 + $0x88] sm:$0x3] }
  0x78   : > { %1055 = vmatpush.msra.mxu2 %v1565_v21  ;;  %941 = vmatpush.msra.mxu1 %v548_v32  ;;  %v397_v62 = vrot.slane %v325_v39, 1  ;;  %v468_v63 = vrot.slane %v325_v39, 2  ;;  %v545_v21 = vld [vmem:[%s2960_s2 + $0x118] sm:$0xff]  ;;  %v328_v32 = vld [vmem:[%s2009_s23 + $0xa0] sm:$0x3]  ;;  %v476_v39 = vrot.slane %v2085_v35, 2 }
  0x79   : > { %1119 = vmatpush.msra.mxu3 %v1582_v6  ;;  %v1595_v6 = vld [vmem:[%s2960_s2 + $0x420] sm:$0xff] }
  0x7a   : > { %1056 = vmatpush.msra.mxu2 %v1564_v36  ;;  %942 = vmatpush.msra.mxu1 %v547_v55  ;;  %v2566_v13 = vsel %vm439_vm1, %v466_v50, %v468_v63  ;;  %v402_v36 = vrot.slane %v328_v32, 1  ;;  %v1559_v63 = vld [vmem:[%s2960_s2 + $0x300] sm:$0xff] }
  0x7b   : > { %1120 = vmatpush.msra.mxu3 %v1581_v22  ;;  %v1561_v22 = vld [vmem:[%s2960_s2 + $0x310] sm:$0xff] }
  0x7c   : > { %1057 = vmatpush.msra.mxu2 %v1563_v56  ;;  %943 = vmatpush.msra.mxu1 %v546_v0  ;;  %v2612_v25 = vsel %vm368_vm0, %v400_v15, %v402_v36  ;;  %v404_v56 = vrot.slane %v2025_v18, 1  ;;  %v1592_v0 = vld [vmem:[%s2960_s2 + $0x408] sm:$0xff]  ;;  %v1591_v36 = vld [vmem:[%s2960_s2 + $0x400] sm:$0xff] }
  0x7d   : > { %700 = vmatmul.f32.gmra.mxu1 %v2442_v60  ;;  %765 = vmatmul.f32.gmra.mxu2 %v2445_v61 }
  0x7e   : > { %830 = vmatmul.f32.gmra.mxu3 %v2207_v7  ;;  %892 = vmatmul.f32.gmra.mxu0 %v2336_v1  ;;  %v1599_v1 = vld [vmem:[%s2960_s2 + $0x440] sm:$0xff] }
  0x7f   : > { %1183 = vmatpush.msra.mxu0 %v1599_v1  ;;  %1121 = vmatpush.msra.mxu3 %v1580_v37  ;;  %v2563_v1 = vsel %vm368_vm0, %v395_v47, %v397_v62  ;;  %v473_v37 = vrot.slane %v328_v32, 2  ;;  %v1576_v47 = vld [vmem:[%s2960_s2 + $0x388] sm:$0xff] }
  0x80   : > { %1058 = vmatpush.msra.mxu2 %v1562_v3  ;;  %944 = vmatpush.msra.mxu1 %v545_v21  ;;  %v543_v62 = vld [vmem:[%s2960_s2 + $0x108] sm:$0xff]  ;;  %v440_v3 = vrot.slane %v2284_v41, 2  ;;  %v331_v21 = vld [vmem:[%s2009_s23 + $0xb8] sm:$0x3] }
  0x81   : > { %1184 = vmatpush.msra.mxu0 %v1598_v23  ;;  %1122 = vmatpush.msra.mxu3 %v1579_v57  ;;  %v1577_v23 = vld [vmem:[%s2960_s2 + $0x390] sm:$0xff]  ;;  %v2615_v50 = vsel %vm439_vm1, %v471_v20, %v473_v37  ;;  %v405_v57 = vrot.slane %v2085_v35, 1  ;;  %v478_v32 = vrot.slane %v331_v21, 2 }
  0x82   : > { %1059 = vmatpush.msra.mxu2 %v1561_v22  ;;  %v542_v22 = vld [vmem:[%s2960_s2 + $0x100] sm:$0xff] }
  0x83   : > { %1185 = vmatpush.msra.mxu0 %v1597_v42  ;;  %1123 = vmatpush.msra.mxu3 %v1578_v4  ;;  %v544_v42 = vld [vmem:[%s2960_s2 + $0x110] sm:$0xff]  ;;  %v2963_v4 = vrot.slane %v2298_v46, 2 }
  0x84   : > { %945 = vmatpush.msra.mxu1 %v544_v42  ;;  %1060 = vmatpush.msra.mxu2 %v1560_v45  ;;  %v2671_v42 = vsel %vm439_vm1, %v476_v39, %v478_v32 }
  0x85   : > { %703 = vmatmul.f32.gmra.mxu1 %v2465_v11  ;;  %768 = vmatmul.f32.gmra.mxu2 %v2468_v12 }
  0x86   : > { %833 = vmatmul.f32.gmra.mxu3 %v2275_v38  ;;  %895 = vmatmul.f32.gmra.mxu0 %v2387_v29 }
  0x87   : > { %1186 = vmatpush.msra.mxu0 %v1596_v58  ;;  %1124 = vmatpush.msra.mxu3 %v1577_v23  ;;  %v475_v58 = vrot.slane %v2025_v18, 2  ;;  %v442_v23 = vsel %vm439_vm1, %v440_v3, %v2963_v4 }
  0x88   : > { %946 = vmatpush.msra.mxu1 %v543_v62  ;;  %1061 = vmatpush.msra.mxu2 %v1559_v63  ;;  %v481_v62 = vrot.slane %v2216_v10, 2 }
  0x89   : > { %1187 = vmatpush.msra.mxu0 %v1595_v6  ;;  %1125 = vmatpush.msra.mxu3 %v1576_v47  ;;  %v2642_v6 = vsel %vm368_vm0, %v404_v56, %v405_v57  ;;  %v2645_v14 = vsel %vm439_vm1, %v475_v58, %v476_v39  ;;  %v410_v58 = vrot.slane %v2216_v10, 1  ;;  %v480_v39 = vrot.slane %v2152_v54, 2 }
  0x8a   : > { %947 = vmatpush.msra.mxu1 %v542_v22 }
  0x8b   : > { %1188 = vmatpush.msra.mxu0 %v1594_v27  ;;  %v407_v27 = vrot.slane %v331_v21, 1 }
  0x8d   : > { %706 = vmatmul.f32.gmra.mxu1 %v2491_v24  ;;  %771 = vmatmul.f32.gmra.mxu2 %v2494_v26  ;;  %v2668_v37 = vsel %vm368_vm0, %v405_v57, %v407_v27  ;;  %v409_v57 = vrot.slane %v2152_v54, 1 }
  0x8e   : > { %836 = vmatmul.f32.gmra.mxu3 %v2019_v16  ;;  %898 = vmatmul.f32.gmra.mxu0 %v2416_v48 }
  0x8f   : > { %v2688_v63 = vsel %vm368_vm0, %v409_v57, %v410_v58 }
  0x95   : > { %709 = vmatmul.f32.gmra.mxu1 %v2514_v43  ;;  %774 = vmatmul.f32.gmra.mxu2 %v2517_v44 }
  0x96   : > { %839 = vmatmul.f32.gmra.mxu3 %v2082_v34  ;;  %901 = vmatmul.f32.gmra.mxu0 %v2442_v60 }
  0x9d   : > { %712 = vmatmul.f32.gmra.mxu1 %v2540_v59  ;;  %777 = vmatmul.f32.gmra.mxu2 %v2543_v51 }
  0x9e   : > { %842 = vmatmul.f32.gmra.mxu3 %v2146_v52  ;;  %904 = vmatmul.f32.gmra.mxu0 %v2465_v11 }
  0xa5   : > { %715 = vmatmul.f32.gmra.mxu1 %v2563_v1  ;;  %780 = vmatmul.f32.gmra.mxu2 %v2566_v13 }
  0xa6   : > { %845 = vmatmul.f32.gmra.mxu3 %v2210_v8  ;;  %907 = vmatmul.f32.gmra.mxu0 %v2491_v24 }
  0xad   : > { %718 = vmatmul.f32.gmra.mxu1 %v2589_v28  ;;  %783 = vmatmul.f32.gmra.mxu2 %v2592_v31 }
  0xae   : > { %848 = vmatmul.f32.gmra.mxu3 %v2022_v17  ;;  %910 = vmatmul.f32.gmra.mxu0 %v2514_v43  ;;  %v1593_v17 = vld [vmem:[%s2960_s2 + $0x410] sm:$0xff] }
  0xaf   : > { %1189 = vmatpush.msra.mxu0 %v1593_v17 }
  0xb1   : > { %1190 = vmatpush.msra.mxu0 %v1592_v0  ;;  %v334_v0 = vld [vmem:[%s2137_s8 + $0x10] sm:$0x3] }
  0xb2   : > { %v412_v54 = vrot.slane %v334_v0, 1  ;;  %v483_v22 = vrot.slane %v334_v0, 2 }
  0xb3   : > { %v2617_v55 = vpop.f32.mrf.mxu1  ;;  %1191 = vmatpush.msra.mxu0 %v1591_v36 }
  0xb4   : > { %v2705_v36 = vsel %vm368_vm0, %v410_v58, %v412_v54  ;;  %v2708_v57 = vsel %vm439_vm1, %v481_v62, %v483_v22  ;;  %v443_v58 = vrot.slane %v2346_v5, 2 }
  0xb5   : > { %721 = vmatmul.f32.gmra.mxu1 %v2612_v25  ;;  %786 = vmatmul.f32.gmra.mxu2 %v2615_v50  ;;  %2970 = vst [vmem:[#allocation7_spill] sm:$0xff] %v2708_v57 }
  0xb6   : > { %851 = vmatmul.f32.gmra.mxu3 %v2079_v33  ;;  %913 = vmatmul.f32.gmra.mxu0 %v2540_v59  ;;  %v1575_v33 = vld [vmem:[%s2960_s2 + $0x380] sm:$0xff] }
  0xb7   : > { %1126 = vmatpush.msra.mxu3 %v1575_v33  ;;  %v2691_v33 = vsel %vm439_vm1, %v480_v39, %v481_v62 }
  0xb8   : > { %v624_v20 = vpop.f32.mrf.mxu0 }
  0xba   : > { %v2647_v15 = vpop.f32.mrf.mxu2  ;;  %v2649_v19 = vpop.f32.mrf.mxu3 }
  0xbd   : > { %724 = vmatmul.f32.gmra.mxu1 %v2642_v6  ;;  %789 = vmatmul.f32.gmra.mxu2 %v2645_v14  ;;  %v2657_v41 = vpop.f32.mrf.mxu1 }
  0xbe   : > { %854 = vmatmul.f32.gmra.mxu3 %v2149_v53  ;;  %916 = vmatmul.f32.gmra.mxu0 %v2563_v1 }
  0xc2   : > { %v2673_v45 = vpop.f32.mrf.mxu2 }
  0xc3   : > { %v2675_v47 = vpop.f32.mrf.mxu3 }
  0xc4   : > { %2968 = vst [vmem:[#allocation5_spill] sm:$0xff] %v2675_v47 }
  0xc5   : > { %727 = vmatmul.f32.gmra.mxu1 %v2668_v37  ;;  %792 = vmatmul.f32.gmra.mxu2 %v2671_v42  ;;  %v627_v17 = vpop.f32.mrf.mxu0 }
  0xc6   : > { %857 = vmatmul.f32.gmra.mxu3 %v2213_v9  ;;  %919 = vmatmul.f32.gmra.mxu0 %v2589_v28  ;;  %v2681_v56 = vpop.f32.mrf.mxu1 }
  0xcc   : > { %v2694_v3 = vpop.f32.mrf.mxu2 }
  0xcd   : > { %730 = vmatmul.f32.gmra.mxu1 %v2688_v63  ;;  %795 = vmatmul.f32.gmra.mxu2 %v2691_v33  ;;  %v2698_v21 = vpop.f32.mrf.mxu3 }
  0xce   : > { %2969 = vst [vmem:[#allocation6_spill] sm:$0xff] %v2698_v21  ;;  %860 = vmatmul.f32.gmra.mxu3 %v2025_v18  ;;  %922 = vmatmul.f32.gmra.mxu0 %v2612_v25 }
  0xcf   : > { %v630_v27 = vpop.f32.mrf.mxu0 }
  0xd0   : > { %v2702_v32 = vpop.f32.mrf.mxu1 }
  0xd5   : > { %733 = vmatmul.f32.gmra.mxu1 %v2705_v36  ;;  %798 = vmatmul.f32.gmra.mxu2 %v2708_v57  ;;  %v2972_v57 = vrot.slane %v2298_v46, 2 }
  0xd6   : > { %863 = vmatmul.f32.gmra.mxu3 %v2085_v35  ;;  %925 = vmatmul.f32.gmra.mxu0 %v2642_v6  ;;  %v2714_v18 = vpop.f32.mrf.mxu2 }
  0xd7   : > { %v2716_v39 = vpop.f32.mrf.mxu3 }
  0xd8   : > { %2971 = vst [vmem:[#allocation8_spill] sm:$0xff] %v2716_v39  ;;  %v444_v39 = vsel %vm439_vm1, %v2972_v57, %v443_v58 }
  0xd9   : > { %v633_v0 = vpop.f32.mrf.mxu0 }
  0xda   : > { %v689_v4 = vpop.f32.mrf.mxu1 }
  0xdb   : > { %v690_v62 = vadd.f32 %v689_v4, %v624_v20 }
  0xdd   : > { %948 = vmatmul.f32.vlgmr.msra.gmra.mxu1 %v442_v23  ;;  %1062 = vmatmul.f32.vlgmr.msra.gmra.mxu2 %v2207_v7 }
  0xde   : > { %928 = vmatmul.f32.gmra.mxu0 %v2668_v37  ;;  %1127 = vmatmul.f32.vlgmr.msra.gmra.mxu3 %v2387_v29 }
  0xe0   : > { %v754_v54 = vpop.f32.mrf.mxu2 }
  0xe1   : > { %v755_v35 = vadd.f32 %v754_v54, %v690_v62  ;;  %v819_v22 = vpop.f32.mrf.mxu3 }
  0xe2   : > { %v692_v21 = vpop.f32.mrf.mxu1 }
  0xe3   : > { %v2725_v47 = vadd.f32 %v819_v22, %v755_v35  ;;  %v2727_v23 = vpop.f32.mrf.mxu0  ;;  %v693_v7 = vadd.f32 %v692_v21, %v627_v17 }
  0xe5   : > { %951 = vmatmul.f32.gmra.mxu1 %v444_v39  ;;  %1065 = vmatmul.f32.gmra.mxu2 %v2275_v38 }
  0xe6   : > { %1130 = vmatmul.f32.gmra.mxu3 %v2416_v48  ;;  %1192 = vmatmul.f32.vlgmr.msra.gmra.mxu0 %v2390_v30 }
  0xe8   : > { %v757_v5 = vpop.f32.mrf.mxu2 }
  0xe9   : > { %v758_v29 = vadd.f32 %v757_v5, %v693_v7  ;;  %v822_v4 = vpop.f32.mrf.mxu3 }
  0xea   : > { %v695_v20 = vpop.f32.mrf.mxu1 }
  0xeb   : > { %v2732_v62 = vadd.f32 %v822_v4, %v758_v29  ;;  %v2734_v46 = vpop.f32.mrf.mxu0  ;;  %v696_v38 = vadd.f32 %v695_v20, %v630_v27 }
  0xed   : > { %954 = vmatmul.f32.gmra.mxu1 %v2281_v40  ;;  %1068 = vmatmul.f32.gmra.mxu2 %v2019_v16 }
  0xee   : > { %1133 = vmatmul.f32.gmra.mxu3 %v2442_v60  ;;  %1195 = vmatmul.f32.gmra.mxu0 %v2419_v49 }
  0xf0   : > { %v760_v48 = vpop.f32.mrf.mxu2 }
  0xf1   : > { %v761_v57 = vadd.f32 %v760_v48, %v696_v38  ;;  %v825_v17 = vpop.f32.mrf.mxu3 }
  0xf2   : > { %v698_v21 = vpop.f32.mrf.mxu1 }
  0xf3   : > { %v2740_v39 = vadd.f32 %v825_v17, %v761_v57  ;;  %v2742_v58 = vpop.f32.mrf.mxu0  ;;  %v699_v16 = vadd.f32 %v698_v21, %v633_v0 }
  0xf5   : > { %957 = vmatmul.f32.gmra.mxu1 %v2339_v2  ;;  %1071 = vmatmul.f32.gmra.mxu2 %v2082_v34 }
  0xf6   : > { %1136 = vmatmul.f32.gmra.mxu3 %v2465_v11  ;;  %1198 = vmatmul.f32.gmra.mxu0 %v2445_v61 }
  0xf8   : > { %v763_v40 = vpop.f32.mrf.mxu2 }
  0xf9   : > { %v764_v60 = vadd.f32 %v763_v40, %v699_v16  ;;  %v828_v27 = vpop.f32.mrf.mxu3  ;;  %v1750_v16 = vld [vmem:[%s2009_s23 + $0x80] sm:$0xff] }
  0xfa   : > { %v701_v54 = vpop.f32.mrf.mxu1 }
  0xfb   : > { %v2748_v35 = vadd.f32 %v828_v27, %v764_v60  ;;  %v2750_v22 = vpop.f32.mrf.mxu0  ;;  %v702_v34 = vadd.f32 %v701_v54, %v2617_v55 }
  0xfd   : > { %960 = vmatmul.f32.gmra.mxu1 %v2390_v30  ;;  %1074 = vmatmul.f32.gmra.mxu2 %v2146_v52 }
  0xfe   : > { %1139 = vmatmul.f32.gmra.mxu3 %v2491_v24  ;;  %1201 = vmatmul.f32.gmra.mxu0 %v2468_v12 }
 0x100   : > { %v766_v2 = vpop.f32.mrf.mxu2 }
 0x101   : > { %v767_v11 = vadd.f32 %v766_v2, %v702_v34  ;;  %v831_v0 = vpop.f32.mrf.mxu3 }
 0x102   : > { %v704_v7 = vpop.f32.mrf.mxu1 }
 0x103   : > { %v2757_v5 = vadd.f32 %v831_v0, %v767_v11  ;;  %v2759_v29 = vpop.f32.mrf.mxu0  ;;  %v705_v52 = vadd.f32 %v704_v7, %v2657_v41 }
 0x105   : > { %963 = vmatmul.f32.gmra.mxu1 %v2419_v49  ;;  %1077 = vmatmul.f32.gmra.mxu2 %v2210_v8  ;;  %v1749_v49 = vld [vmem:[%s2009_s23 + $0x78] sm:$0xff] }
 0x106   : > { %1142 = vmatmul.f32.gmra.mxu3 %v2514_v43  ;;  %1204 = vmatmul.f32.gmra.mxu0 %v2494_v26 }
 0x108   : > { %v769_v30 = vpop.f32.mrf.mxu2 }
 0x109   : > { %v770_v24 = vadd.f32 %v769_v30, %v705_v52  ;;  %v834_v55 = vpop.f32.mrf.mxu3 }
 0x10a   : > { %v707_v4 = vpop.f32.mrf.mxu1 }
 0x10b   : > { %v2766_v20 = vadd.f32 %v834_v55, %v770_v24  ;;  %v2768_v38 = vpop.f32.mrf.mxu0  ;;  %v708_v8 = vadd.f32 %v707_v4, %v2681_v56 }
 0x10d   : > { %966 = vmatmul.f32.gmra.mxu1 %v2445_v61  ;;  %1080 = vmatmul.f32.gmra.mxu2 %v1749_v49 }
 0x10e   : > { %1145 = vmatmul.f32.gmra.mxu3 %v2540_v59  ;;  %1207 = vmatmul.f32.gmra.mxu0 %v2517_v44 }
 0x110   : > { %v772_v43 = vpop.f32.mrf.mxu2 }
 0x111   : > { %v773_v41 = vadd.f32 %v772_v43, %v708_v8  ;;  %v837_v48 = vpop.f32.mrf.mxu3 }
 0x112   : > { %v710_v57 = vpop.f32.mrf.mxu1 }
 0x113   : > { %v2775_v17 = vadd.f32 %v837_v48, %v773_v41  ;;  %v2777_v21 = vpop.f32.mrf.mxu0  ;;  %v711_v61 = vadd.f32 %v710_v57, %v2702_v32 }
 0x115   : > { %969 = vmatmul.f32.gmra.mxu1 %v2468_v12  ;;  %1083 = vmatmul.f32.gmra.mxu2 %v1750_v16 }
 0x116   : > { %1148 = vmatmul.f32.gmra.mxu3 %v2563_v1  ;;  %1210 = vmatmul.f32.gmra.mxu0 %v2543_v51 }
 0x118   : > { %v775_v59 = vpop.f32.mrf.mxu2 }
 0x119   : > { %v776_v56 = vadd.f32 %v775_v59, %v711_v61  ;;  %v840_v40 = vpop.f32.mrf.mxu3 }
 0x11a   : > { %v713_v60 = vpop.f32.mrf.mxu1 }
 0x11b   : > { %v2784_v27 = vadd.f32 %v840_v40, %v776_v56  ;;  %v2786_v54 = vpop.f32.mrf.mxu0  ;;  %v714_v12 = vadd.f32 %v713_v60, %v2647_v15 }
 0x11d   : > { %972 = vmatmul.f32.gmra.mxu1 %v2494_v26  ;;  %1086 = vmatmul.f32.gmra.mxu2 %v2149_v53 }
 0x11e   : > { %1151 = vmatmul.f32.gmra.mxu3 %v2589_v28  ;;  %1213 = vmatmul.f32.gmra.mxu0 %v2566_v13 }
 0x120   : > { %v778_v1 = vpop.f32.mrf.mxu2 }
 0x121   : > { %v779_v32 = vadd.f32 %v778_v1, %v714_v12  ;;  %v843_v34 = vpop.f32.mrf.mxu3 }
 0x122   : > { %v716_v2 = vpop.f32.mrf.mxu1 }
 0x123   : > { %v844_v11 = vadd.f32 %v843_v34, %v779_v32  ;;  %v908_v0 = vpop.f32.mrf.mxu0  ;;  %v717_v53 = vadd.f32 %v716_v2, %v2673_v45  ;;  %v335_v34 = vld [vmem:[%s2137_s8 + $0x18] sm:$0xff]  ;;  %v336_v2 = vld [vmem:[%s2137_s8 + $0x20] sm:$0xff] }
 0x125   : > { %v2793_v7 = vadd.f32 %v908_v0, %v844_v11  ;;  %975 = vmatmul.f32.gmra.mxu1 %v2517_v44  ;;  %1089 = vmatmul.f32.gmra.mxu2 %v2213_v9  ;;  %v1751_v44 = vld [vmem:[%s2009_s23 + $0xa8] sm:$0xff]  ;;  %v415_v0 = vrot.slane %v336_v2, 1 }
 0x126   : > { %1154 = vmatmul.f32.gmra.mxu3 %v2612_v25  ;;  %1216 = vmatmul.f32.gmra.mxu0 %v2592_v31 }
 0x128   : > { %v781_v26 = vpop.f32.mrf.mxu2 }
 0x129   : > { %v782_v28 = vadd.f32 %v781_v26, %v717_v53  ;;  %v846_v15 = vpop.f32.mrf.mxu3 }
 0x12a   : > { %v719_v52 = vpop.f32.mrf.mxu1 }
 0x12b   : > { %v847_v30 = vadd.f32 %v846_v15, %v782_v28  ;;  %v911_v24 = vpop.f32.mrf.mxu0  ;;  %v720_v9 = vadd.f32 %v719_v52, %v2694_v3 }
 0x12d   : > { %v2800_v55 = vadd.f32 %v911_v24, %v847_v30  ;;  %978 = vmatmul.f32.gmra.mxu1 %v2543_v51  ;;  %1092 = vmatmul.f32.gmra.mxu2 %v1751_v44  ;;  %v1752_v51 = vld [vmem:[%s2009_s23 + $0xb0] sm:$0xff]  ;;  %v337_v44 = vld [vmem:[%s2137_s8 + $0x28] sm:$0x3]  ;;  %s1768_s23 = sshra.s32 %s1392_s14, 4  ;;  %s1769_s23 = int_to_ptr.hbm [resolvable:$true] %s1768_s23 }
 0x12e   : > { %1157 = vmatmul.f32.gmra.mxu3 %v2642_v6  ;;  %1219 = vmatmul.f32.gmra.mxu0 %v2615_v50  ;;  %p1775_p5 = scmp.lt.s32.totalorder %s1769_s23, %s2962_s4 }
 0x130   : > { %v784_v25 = vpop.f32.mrf.mxu2 }
 0x131   : > { %v785_v45 = vadd.f32 %v784_v25, %v720_v9  ;;  %v849_v4 = vpop.f32.mrf.mxu3  ;;  %v485_v9 = vrot.slane %v335_v34, 2  ;;  %v417_v25 = vrot.slane %v337_v44, 1 }
 0x132   : > { %v722_v49 = vpop.f32.mrf.mxu1 }
 0x133   : > { %v850_v8 = vadd.f32 %v849_v4, %v785_v45  ;;  %v914_v43 = vpop.f32.mrf.mxu0  ;;  %v723_v6 = vadd.f32 %v722_v49, %v2714_v18  ;;  %v486_v45 = vrot.slane %v336_v2, 2 }
 0x135   : > { %v2807_v41 = vadd.f32 %v914_v43, %v850_v8  ;;  %981 = vmatmul.f32.gmra.mxu1 %v2566_v13  ;;  %1095 = vmatmul.f32.gmra.mxu2 %v1752_v51  ;;  %v1753_v13 = vld [vmem:[%s2137_s8] sm:$0xff]  ;;  %s1770_s8 = scalar_lea.hbm %s1769_s23, 128 }
 0x136   : > { %1160 = vmatmul.f32.gmra.mxu3 %v2668_v37  ;;  %1222 = vmatmul.f32.gmra.mxu0 %v2645_v14  ;;  %p1771_p1 = scmp.ne.s32.totalorder %s1769_s23, %s1770_s8  ;;  %p1776_p6 = scmp.lt.s32.totalorder %s1774_s5, %s1770_s8 }
 0x138   : > { %v787_v3 = vpop.f32.mrf.mxu2  ;;  %p1772_p2 = pnand %p1771_p1, %p1928_p3  ;;  %p1777_p7 = por %p1776_p6, %p1775_p5 }
 0x139   : > { %v788_v48 = vadd.f32 %v787_v3, %v723_v6  ;;  %v852_v57 = vpop.f32.mrf.mxu3  ;;  %v418_v3 = vsel %vm368_vm0, %v415_v0, %v417_v25 }
 0x13a   : > { %v725_v16 = vpop.f32.mrf.mxu1  ;;  %p1773_p4 = pneg %p1772_p2 }
 0x13b   : > { %v853_v61 = vadd.f32 %v852_v57, %v788_v48  ;;  %v917_v59 = vpop.f32.mrf.mxu0  ;;  %v726_v37 = vadd.f32 %v725_v16, %v2649_v19  ;;  %v487_v48 = vsel %vm439_vm1, %v485_v9, %v486_v45  ;;  %v2976_v57 = vld [vmem:[#allocation8_spill] sm:$0xff] }
 0x13c   : > { %p1778_p9 = pnand %p1777_p7, %p1773_p4 }
 0x13d   : > { %v2814_v56 = vadd.f32 %v917_v59, %v853_v61  ;;  %984 = vmatmul.f32.gmra.mxu1 %v2592_v31  ;;  %1098 = vmatmul.f32.gmra.mxu2 %v1753_v13  ;;  %v2973_v31 = vld [vmem:[#allocation5_spill] sm:$0xff]  ;;  %v488_v61 = vrot.slane %v337_v44, 2 }
 0x13e   : > { %1163 = vmatmul.f32.gmra.mxu3 %v2688_v63  ;;  %1225 = vmatmul.f32.gmra.mxu0 %v2671_v42  ;;  %v414_v63 = vrot.slane %v335_v34, 1 }
 0x140   : > { %v790_v18 = vpop.f32.mrf.mxu2  ;;  %v416_v24 = vsel %vm368_vm0, %v414_v63, %v415_v0 }
 0x141   : > { %v791_v40 = vadd.f32 %v790_v18, %v726_v37  ;;  %v855_v60 = vpop.f32.mrf.mxu3 }
 0x142   : > { %v728_v12 = vpop.f32.mrf.mxu1 }
 0x143   : > { %v856_v1 = vadd.f32 %v855_v60, %v791_v40  ;;  %v920_v32 = vpop.f32.mrf.mxu0  ;;  %v729_v19 = vadd.f32 %v728_v12, %v2973_v31  ;;  %v489_v12 = vsel %vm439_vm1, %v486_v45, %v488_v61 }
 0x145   : > { %v2823_v11 = vadd.f32 %v920_v32, %v856_v1  ;;  %987 = vmatmul.f32.gmra.mxu1 %v2615_v50  ;;  %1101 = vmatmul.f32.gmra.mxu2 %v2216_v10  ;;  %v2974_v10 = vld [vmem:[#allocation7_spill] sm:$0xff] }
 0x146   : > { %1166 = vmatmul.f32.gmra.mxu3 %v2705_v36  ;;  %1228 = vmatmul.f32.gmra.mxu0 %v2691_v33  ;;  %v2975_v33 = vld [vmem:[#allocation6_spill] sm:$0xff] }
 0x148   : > { %v793_v53 = vpop.f32.mrf.mxu2 }
 0x149   : > { %v794_v26 = vadd.f32 %v793_v53, %v729_v19  ;;  %v858_v28 = vpop.f32.mrf.mxu3  ;;  %v2851_v53 = vld [vmem:[%s2961_s3] ss:$0 sm:$0xff] }
 0x14a   : > { %v731_v15 = vpop.f32.mrf.mxu1 }
 0x14b   : > { %v859_v52 = vadd.f32 %v858_v28, %v794_v26  ;;  %v923_v30 = vpop.f32.mrf.mxu0  ;;  %v732_v36 = vadd.f32 %v731_v15, %v2975_v33 }
 0x14d   : > { %v2832_v50 = vadd.f32 %v923_v30, %v859_v52  ;;  %990 = vmatmul.f32.gmra.mxu1 %v2645_v14  ;;  %1104 = vmatmul.f32.gmra.mxu2 %v335_v34  ;;  %v888_v30 = vadd.f32 %v2734_v46, %v2732_v62  ;;  %v891_v62 = vadd.f32 %v2742_v58, %v2740_v39 }
 0x14e   : > { %1169 = vmatmul.f32.gmra.mxu3 %v416_v24  ;;  %1231 = vmatmul.f32.gmra.mxu0 %v2974_v10  ;;  %v894_v58 = vadd.f32 %v2750_v22, %v2748_v35  ;;  %v897_v35 = vadd.f32 %v2759_v29, %v2757_v5  ;;  %v900_v5 = vadd.f32 %v2768_v38, %v2766_v20 }
 0x14f   : > { %v903_v20 = vadd.f32 %v2777_v21, %v2775_v17  ;;  %v906_v17 = vadd.f32 %v2786_v54, %v2784_v27 }
 0x150   : > { %v796_v4 = vpop.f32.mrf.mxu2 }
 0x151   : > { %v797_v49 = vadd.f32 %v796_v4, %v732_v36  ;;  %v861_v8 = vpop.f32.mrf.mxu3 }
 0x152   : > { %v734_v43 = vpop.f32.mrf.mxu1 }
 0x153   : > { %v862_v51 = vadd.f32 %v861_v8, %v797_v49  ;;  %v926_v6 = vpop.f32.mrf.mxu0  ;;  %v735_v16 = vadd.f32 %v734_v43, %v2976_v57 }
 0x155   : > { %v2839_v14 = vadd.f32 %v926_v6, %v862_v51  ;;  %993 = vmatmul.f32.gmra.mxu1 %v2671_v42  ;;  %1107 = vmatmul.f32.gmra.mxu2 %v336_v2  ;;  %v885_v42 = vadd.f32 %v2727_v23, %v2725_v47 }
 0x156   : > { %1172 = vmatmul.f32.gmra.mxu3 %v418_v3  ;;  %1234 = vmatmul.f32.gmra.mxu0 %v487_v48 }
 0x158   : > { %v799_v59 = vpop.f32.mrf.mxu2 }
 0x159   : > { %v800_v13 = vadd.f32 %v799_v59, %v735_v16  ;;  %v864_v37 = vpop.f32.mrf.mxu3 }
 0x15a   : > { %v949_v18 = vpop.f32.mrf.mxu1 }
 0x15b   : > { %v865_v40 = vadd.f32 %v864_v37, %v800_v13  ;;  %v929_v60 = vpop.f32.mrf.mxu0  ;;  %v950_v63 = vadd.f32 %v949_v18, %v885_v42 }
 0x15d   : > { %v2844_v1 = vadd.f32 %v929_v60, %v865_v40 }
 0x15e   : > { %1237 = vmatmul.f32.gmra.mxu0 %v489_v12 }
 0x160   : > { %v1063_v32 = vpop.f32.mrf.mxu2 }
 0x161   : > { %v1128_v34 = vpop.f32.mrf.mxu3 }
 0x162   : > { %v1129_v2 = vadd.f32 %v1128_v34, %v1063_v32  ;;  %v952_v31 = vpop.f32.mrf.mxu1 }
 0x163   : > { %v1193_v19 = vpop.f32.mrf.mxu0  ;;  %v953_v10 = vadd.f32 %v952_v31, %v888_v30 }
 0x164   : > { %v1194_v0 = vadd.f32 %v1193_v19, %v1129_v2 }
 0x166   : > { %v1241_v26 = vadd.f32 %v1194_v0, %v950_v63 }
 0x168   : > { %v1261_v28 = vadd.f32 %v2851_v53, %v1241_v26  ;;  %v1066_v15 = vpop.f32.mrf.mxu2 }
 0x169   : > { %v1131_v52 = vpop.f32.mrf.mxu3 }
 0x16a   : > { %v1277_v47 = vadd.f32 3.0, %v1261_v28  ;;  %v1132_v23 = vadd.f32 %v1131_v52, %v1066_v15  ;;  %v955_v24 = vpop.f32.mrf.mxu1 }
 0x16b   : > { %v1196_v44 = vpop.f32.mrf.mxu0  ;;  %v956_v48 = vadd.f32 %v955_v24, %v891_v62 }
 0x16c   : > { %v1293_v33 = vmax.f32 %v1277_v47, 0.0  ;;  %v1197_v36 = vadd.f32 %v1196_v44, %v1132_v23 }
 0x16e   : > { %v1309_v9 = vmin.f32 %v1293_v33, 6.0  ;;  %v1242_v25 = vadd.f32 %v1197_v36, %v953_v10 }
 0x170   : > { %v1325_v45 = vmul.f32 0.16666667, %v1309_v9  ;;  %v1262_v4 = vadd.f32 %v2851_v53, %v1242_v25  ;;  %v1069_v49 = vpop.f32.mrf.mxu2 }
 0x171   : > { %v1134_v8 = vpop.f32.mrf.mxu3 }
 0x172   : > { %v1341_v46 = vmul.f32 %v1325_v45, %v1261_v28  ;;  %v1278_v43 = vadd.f32 3.0, %v1262_v4  ;;  %v1135_v51 = vadd.f32 %v1134_v8, %v1069_v49  ;;  %v958_v6 = vpop.f32.mrf.mxu1 }
 0x173   : > { %v1199_v3 = vpop.f32.mrf.mxu0  ;;  %v959_v42 = vadd.f32 %v958_v6, %v894_v58 }
 0x174   : > { %1357 = vst [vmem:[%s2862_s24] sm:$0xff] %v1341_v46  ;;  %v1294_v57 = vmax.f32 %v1278_v43, 0.0  ;;  %v1200_v16 = vadd.f32 %v1199_v3, %v1135_v51 }
 0x176   : > { %v1310_v61 = vmin.f32 %v1294_v57, 6.0  ;;  %v1243_v59 = vadd.f32 %v1200_v16, %v956_v48 }
 0x178   : > { %v1326_v13 = vmul.f32 0.16666667, %v1310_v61  ;;  %v1263_v37 = vadd.f32 %v2851_v53, %v1243_v59  ;;  %v1072_v18 = vpop.f32.mrf.mxu2 }
 0x179   : > { %v1137_v39 = vpop.f32.mrf.mxu3 }
 0x17a   : > { %v1342_v40 = vmul.f32 %v1326_v13, %v1262_v4  ;;  %v1279_v60 = vadd.f32 3.0, %v1263_v37  ;;  %v1138_v12 = vadd.f32 %v1137_v39, %v1072_v18  ;;  %v961_v32 = vpop.f32.mrf.mxu1 }
 0x17b   : > { %v1202_v34 = vpop.f32.mrf.mxu0  ;;  %v962_v24 = vadd.f32 %v961_v32, %v897_v35 }
 0x17c   : > { %1358 = vst [vmem:[%s2862_s24 + $0x8] sm:$0xff] %v1342_v40  ;;  %v1295_v2 = vmax.f32 %v1279_v60, 0.0  ;;  %v1203_v31 = vadd.f32 %v1202_v34, %v1138_v12 }
 0x17e   : > { %v1311_v19 = vmin.f32 %v1295_v2, 6.0  ;;  %v1244_v63 = vadd.f32 %v1203_v31, %v959_v42 }
 0x180   : > { %v1327_v0 = vmul.f32 0.16666667, %v1311_v19  ;;  %v1264_v26 = vadd.f32 %v2851_v53, %v1244_v63  ;;  %v1075_v28 = vpop.f32.mrf.mxu2 }
 0x181   : > { %v1140_v15 = vpop.f32.mrf.mxu3 }
 0x182   : > { %v1343_v22 = vmul.f32 %v1327_v0, %v1263_v37  ;;  %v1280_v52 = vadd.f32 3.0, %v1264_v26  ;;  %v1141_v30 = vadd.f32 %v1140_v15, %v1075_v28  ;;  %v964_v47 = vpop.f32.mrf.mxu1 }
 0x183   : > { %v1205_v23 = vpop.f32.mrf.mxu0  ;;  %v965_v43 = vadd.f32 %v964_v47, %v900_v5 }
 0x184   : > { %1359 = vst [vmem:[%s2862_s24 + $0x10] sm:$0xff] %v1343_v22  ;;  %v1296_v44 = vmax.f32 %v1280_v52, 0.0  ;;  %v1206_v10 = vadd.f32 %v1205_v23, %v1141_v30 }
 0x186   : > { %v1312_v33 = vmin.f32 %v1296_v44, 6.0  ;;  %v1245_v36 = vadd.f32 %v1206_v10, %v962_v24 }
 0x188   : > { %v1328_v9 = vmul.f32 0.16666667, %v1312_v33  ;;  %v1265_v25 = vadd.f32 %v2851_v53, %v1245_v36  ;;  %v1078_v45 = vpop.f32.mrf.mxu2 }
 0x189   : > { %v1143_v4 = vpop.f32.mrf.mxu3 }
 0x18a   : > { %v1344_v29 = vmul.f32 %v1328_v9, %v1264_v26  ;;  %v1281_v49 = vadd.f32 3.0, %v1265_v25  ;;  %v1144_v8 = vadd.f32 %v1143_v4, %v1078_v45  ;;  %v967_v62 = vpop.f32.mrf.mxu1 }
 0x18b   : > { %v1208_v46 = vpop.f32.mrf.mxu0  ;;  %v968_v58 = vadd.f32 %v967_v62, %v903_v20 }
 0x18c   : > { %1360 = vst [vmem:[%s2862_s24 + $0x18] sm:$0xff] %v1344_v29  ;;  %v1297_v51 = vmax.f32 %v1281_v49, 0.0  ;;  %v1209_v6 = vadd.f32 %v1208_v46, %v1144_v8 }
 0x18e   : > { %v1313_v3 = vmin.f32 %v1297_v51, 6.0  ;;  %v1246_v48 = vadd.f32 %v1209_v6, %v965_v43 }
 0x190   : > { %v1329_v57 = vmul.f32 0.16666667, %v1313_v3  ;;  %v1266_v16 = vadd.f32 %v2851_v53, %v1246_v48  ;;  %v1081_v61 = vpop.f32.mrf.mxu2 }
 0x191   : > { %v1146_v59 = vpop.f32.mrf.mxu3 }
 0x192   : > { %v1345_v38 = vmul.f32 %v1329_v57, %v1265_v25  ;;  %v1282_v13 = vadd.f32 3.0, %v1266_v16  ;;  %v1147_v37 = vadd.f32 %v1146_v59, %v1081_v61  ;;  %v970_v18 = vpop.f32.mrf.mxu1 }
 0x193   : > { %v1211_v39 = vpop.f32.mrf.mxu0  ;;  %v971_v28 = vadd.f32 %v970_v18, %v906_v17 }
 0x194   : > { %1361 = vst [vmem:[%s2862_s24 + $0x20] sm:$0xff] %v1345_v38  ;;  %v1298_v40 = vmax.f32 %v1282_v13, 0.0  ;;  %v1212_v60 = vadd.f32 %v1211_v39, %v1147_v37 }
 0x196   : > { %v1314_v12 = vmin.f32 %v1298_v40, 6.0  ;;  %v1247_v32 = vadd.f32 %v1212_v60, %v968_v58 }
 0x198   : > { %v1330_v34 = vmul.f32 0.16666667, %v1314_v12  ;;  %v1267_v42 = vadd.f32 %v2851_v53, %v1247_v32  ;;  %v1084_v2 = vpop.f32.mrf.mxu2 }
 0x199   : > { %v1149_v31 = vpop.f32.mrf.mxu3 }
 0x19a   : > { %v1346_v21 = vmul.f32 %v1330_v34, %v1266_v16  ;;  %v1283_v19 = vadd.f32 3.0, %v1267_v42  ;;  %v1150_v63 = vadd.f32 %v1149_v31, %v1084_v2  ;;  %v973_v0 = vpop.f32.mrf.mxu1 }
 0x19b   : > { %v1214_v26 = vpop.f32.mrf.mxu0  ;;  %v974_v36 = vadd.f32 %v973_v0, %v2793_v7 }
 0x19c   : > { %1362 = vst [vmem:[%s2862_s24 + $0x28] sm:$0xff] %v1346_v21  ;;  %v1299_v15 = vmax.f32 %v1283_v19, 0.0  ;;  %v1215_v35 = vadd.f32 %v1214_v26, %v1150_v63 }
 0x19e   : > { %v1315_v22 = vmin.f32 %v1299_v15, 6.0  ;;  %v1248_v52 = vadd.f32 %v1215_v35, %v971_v28 }
 0x1a0   : > { %v1331_v30 = vmul.f32 0.16666667, %v1315_v22  ;;  %v1268_v47 = vadd.f32 %v2851_v53, %v1248_v52  ;;  %v1087_v23 = vpop.f32.mrf.mxu2 }
 0x1a1   : > { %v1152_v24 = vpop.f32.mrf.mxu3 }
 0x1a2   : > { %v1347_v44 = vmul.f32 %v1331_v30, %v1267_v42  ;;  %v1284_v10 = vadd.f32 3.0, %v1268_v47  ;;  %v1153_v27 = vadd.f32 %v1152_v24, %v1087_v23  ;;  %v976_v54 = vpop.f32.mrf.mxu1 }
 0x1a3   : > { %v1217_v33 = vpop.f32.mrf.mxu0  ;;  %v977_v3 = vadd.f32 %v976_v54, %v2800_v55 }
 0x1a4   : > { %1363 = vst [vmem:[%s2862_s24 + $0x30] sm:$0xff] %v1347_v44  ;;  %v1300_v9 = vmax.f32 %v1284_v10, 0.0  ;;  %v1218_v25 = vadd.f32 %v1217_v33, %v1153_v27 }
 0x1a6   : > { %v1316_v45 = vmin.f32 %v1300_v9, 6.0  ;;  %v1249_v4 = vadd.f32 %v1218_v25, %v974_v36 }
 0x1a8   : > { %v1332_v5 = vmul.f32 0.16666667, %v1316_v45  ;;  %v1269_v29 = vadd.f32 %v2851_v53, %v1249_v4  ;;  %v1090_v49 = vpop.f32.mrf.mxu2 }
 0x1a9   : > { %v1155_v8 = vpop.f32.mrf.mxu3 }
 0x1aa   : > { %v1348_v62 = vmul.f32 %v1332_v5, %v1268_v47  ;;  %v1285_v46 = vadd.f32 3.0, %v1269_v29  ;;  %v1156_v43 = vadd.f32 %v1155_v8, %v1090_v49  ;;  %v979_v51 = vpop.f32.mrf.mxu1 }
 0x1ab   : > { %v1220_v6 = vpop.f32.mrf.mxu0  ;;  %v980_v40 = vadd.f32 %v979_v51, %v2807_v41 }
 0x1ac   : > { %1364 = vst [vmem:[%s2862_s24 + $0x38] sm:$0xff] %v1348_v62  ;;  %v1301_v48 = vmax.f32 %v1285_v46, 0.0  ;;  %v1221_v7 = vadd.f32 %v1220_v6, %v1156_v43 }
 0x1ae   : > { %v1317_v57 = vmin.f32 %v1301_v48, 6.0  ;;  %v1250_v16 = vadd.f32 %v1221_v7, %v977_v3 }
 0x1b0   : > { %v1333_v61 = vmul.f32 0.16666667, %v1317_v57  ;;  %v1270_v59 = vadd.f32 %v2851_v53, %v1250_v16  ;;  %v1093_v20 = vpop.f32.mrf.mxu2 }
 0x1b1   : > { %v1158_v38 = vpop.f32.mrf.mxu3 }
 0x1b2   : > { %v1349_v13 = vmul.f32 %v1333_v61, %v1269_v29  ;;  %v1286_v37 = vadd.f32 3.0, %v1270_v59  ;;  %v1159_v18 = vadd.f32 %v1158_v38, %v1093_v20  ;;  %v982_v39 = vpop.f32.mrf.mxu1 }
 0x1b3   : > { %v1223_v58 = vpop.f32.mrf.mxu0  ;;  %v983_v26 = vadd.f32 %v982_v39, %v2814_v56 }
 0x1b4   : > { %1365 = vst [vmem:[%s2862_s24 + $0x40] sm:$0xff] %v1349_v13  ;;  %v1302_v60 = vmax.f32 %v1286_v37, 0.0  ;;  %v1224_v55 = vadd.f32 %v1223_v58, %v1159_v18 }
 0x1b6   : > { %v1318_v12 = vmin.f32 %v1302_v60, 6.0  ;;  %v1251_v32 = vadd.f32 %v1224_v55, %v980_v40 }
 0x1b8   : > { %v1334_v34 = vmul.f32 0.16666667, %v1318_v12  ;;  %v1271_v42 = vadd.f32 %v2851_v53, %v1251_v32  ;;  %v1096_v2 = vpop.f32.mrf.mxu2 }
 0x1b9   : > { %v1161_v31 = vpop.f32.mrf.mxu3 }
 0x1ba   : > { %v1350_v17 = vmul.f32 %v1334_v34, %v1270_v59  ;;  %v1287_v21 = vadd.f32 3.0, %v1271_v42  ;;  %v1162_v19 = vadd.f32 %v1161_v31, %v1096_v2  ;;  %v985_v63 = vpop.f32.mrf.mxu1 }
 0x1bb   : > { %v1226_v0 = vpop.f32.mrf.mxu0  ;;  %v986_v27 = vadd.f32 %v985_v63, %v2823_v11 }
 0x1bc   : > { %1366 = vst [vmem:[%s2862_s24 + $0x48] sm:$0xff] %v1350_v17  ;;  %v1303_v28 = vmax.f32 %v1287_v21, 0.0  ;;  %v1227_v41 = vadd.f32 %v1226_v0, %v1162_v19 }
 0x1be   : > { %v1319_v15 = vmin.f32 %v1303_v28, 6.0  ;;  %v1252_v35 = vadd.f32 %v1227_v41, %v983_v26 }
 0x1c0   : > { %v1335_v22 = vmul.f32 0.16666667, %v1319_v15  ;;  %v1272_v52 = vadd.f32 %v2851_v53, %v1252_v35  ;;  %v1099_v30 = vpop.f32.mrf.mxu2 }
 0x1c1   : > { %v1164_v47 = vpop.f32.mrf.mxu3 }
 0x1c2   : > { %v1351_v23 = vmul.f32 %v1335_v22, %v1271_v42  ;;  %v1288_v24 = vadd.f32 3.0, %v1272_v52  ;;  %v1165_v44 = vadd.f32 %v1164_v47, %v1099_v30  ;;  %v988_v56 = vpop.f32.mrf.mxu1 }
 0x1c3   : > { %v1229_v10 = vpop.f32.mrf.mxu0  ;;  %v989_v46 = vadd.f32 %v988_v56, %v2832_v50 }
 0x1c4   : > { %1367 = vst [vmem:[%s2862_s24 + $0x50] sm:$0xff] %v1351_v23  ;;  %v1304_v54 = vmax.f32 %v1288_v24, 0.0  ;;  %v1230_v33 = vadd.f32 %v1229_v10, %v1165_v44 }
 0x1c6   : > { %v1320_v36 = vmin.f32 %v1304_v54, 6.0  ;;  %v1253_v9 = vadd.f32 %v1230_v33, %v986_v27 }
 0x1c8   : > { %v1336_v25 = vmul.f32 0.16666667, %v1320_v36  ;;  %v1273_v45 = vadd.f32 %v2851_v53, %v1253_v9  ;;  %v1102_v4 = vpop.f32.mrf.mxu2 }
 0x1c9   : > { %v1167_v5 = vpop.f32.mrf.mxu3 }
 0x1ca   : > { %v1352_v29 = vmul.f32 %v1336_v25, %v1272_v52  ;;  %v1289_v49 = vadd.f32 3.0, %v1273_v45  ;;  %v1168_v8 = vadd.f32 %v1167_v5, %v1102_v4  ;;  %v991_v3 = vpop.f32.mrf.mxu1 }
 0x1cb   : > { %v1232_v62 = vpop.f32.mrf.mxu0  ;;  %v992_v13 = vadd.f32 %v991_v3, %v2839_v14 }
 0x1cc   : > { %1368 = vst [vmem:[%s2862_s24 + $0x58] sm:$0xff] %v1352_v29  ;;  %v1305_v43 = vmax.f32 %v1289_v49, 0.0  ;;  %v1233_v11 = vadd.f32 %v1232_v62, %v1168_v8 }
 0x1ce   : > { %v1321_v51 = vmin.f32 %v1305_v43, 6.0  ;;  %v1254_v6 = vadd.f32 %v1233_v11, %v989_v46 }
 0x1d0   : > { %v1337_v48 = vmul.f32 0.16666667, %v1321_v51  ;;  %v1274_v7 = vadd.f32 %v2851_v53, %v1254_v6  ;;  %v1105_v57 = vpop.f32.mrf.mxu2 }
 0x1d1   : > { %v1170_v16 = vpop.f32.mrf.mxu3 }
 0x1d2   : > { %v1353_v61 = vmul.f32 %v1337_v48, %v1273_v45  ;;  %v1290_v59 = vadd.f32 3.0, %v1274_v7  ;;  %v1171_v20 = vadd.f32 %v1170_v16, %v1105_v57  ;;  %v994_v55 = vpop.f32.mrf.mxu1 }
 0x1d3   : > { %v1235_v38 = vpop.f32.mrf.mxu0  ;;  %v995_v14 = vadd.f32 %v994_v55, %v2844_v1 }
 0x1d4   : > { %1369 = vst [vmem:[%s2862_s24 + $0x60] sm:$0xff] %v1353_v61  ;;  %v1306_v50 = vmax.f32 %v1290_v59, 0.0  ;;  %v1236_v37 = vadd.f32 %v1235_v38, %v1171_v20 }
 0x1d6   : > { %v1322_v18 = vmin.f32 %v1306_v50, 6.0  ;;  %v1255_v39 = vadd.f32 %v1236_v37, %v992_v13 }
 0x1d8   : > { %v1338_v58 = vmul.f32 0.16666667, %v1322_v18  ;;  %v1275_v40 = vadd.f32 %v2851_v53, %v1255_v39  ;;  %v1108_v60 = vpop.f32.mrf.mxu2 }
 0x1d9   : > { %v1173_v12 = vpop.f32.mrf.mxu3 }
 0x1da   : > { %v1354_v32 = vmul.f32 %v1338_v58, %v1274_v7  ;;  %v1291_v34 = vadd.f32 3.0, %v1275_v40  ;;  %v1174_v42 = vadd.f32 %v1173_v12, %v1108_v60 }
 0x1db   : > { %v1238_v2 = vpop.f32.mrf.mxu0 }
 0x1dc   : > { %1370 = vst [vmem:[%s2862_s24 + $0x68] sm:$0xff] %v1354_v32  ;;  %v1307_v31 = vmax.f32 %v1291_v34, 0.0  ;;  %v1239_v17 = vadd.f32 %v1238_v2, %v1174_v42 }
 0x1de   : > { %v1323_v21 = vmin.f32 %v1307_v31, 6.0  ;;  %v1256_v19 = vadd.f32 %v1239_v17, %v995_v14 }
 0x1e0   : > { %v1339_v63 = vmul.f32 0.16666667, %v1323_v21  ;;  %v1276_v0 = vadd.f32 %v2851_v53, %v1256_v19 }
 0x1e2   : > { %v1355_v26 = vmul.f32 %v1339_v63, %v1275_v40  ;;  %v1292_v28 = vadd.f32 3.0, %v1276_v0 }
 0x1e4   : > { %1371 = vst [vmem:[%s2862_s24 + $0x70] sm:$0xff] %v1355_v26  ;;  %v1308_v1 = vmax.f32 %v1292_v28, 0.0 }
 0x1e6   : > { %v1324_v41 = vmin.f32 %v1308_v1, 6.0 }
 0x1e8   : > { %v1340_v15 = vmul.f32 0.16666667, %v1324_v41 }
 0x1ea   : > { %v1356_v35 = vmul.f32 %v1340_v15, %v1276_v0 }
 0x1ec   : > { %1372 = vst [vmem:[%s2862_s24 + $0x78] sm:$0xff] %v1356_v35 }
 0x1ed   : > { %1781 = shalt.err (!%p1778_p9)
}
 0x1ee   : > { %s1850_s11 = smov 128   ;;  %s1851_s24 = smov 8  }
 0x1ef   : > { %1675 = dma.vmem_to_hbm [thread:$0]  (%p1928_p3), %s1390_s27, 2048, %s1392_s14, %s1374_s12, %s1850_s11, %s1850_s11, %s1851_s24  }
 0x1f0 PF: > { %p1681_p10 = scmp.ge.s32.totalorder %s1848_s22, 2  ;;  %s1406_s18 = sand.u32 1, %s1820_s15  }
 0x1f1   : > { %s1407_s19 = scalar_lea.sflag [#allocation3], %s1406_s18 }
 0x1f2   : > { %p1678_p11 = pnand %p1681_p10, %p1937_p8 }
 0x1f4   : > { %p1679_p12 = pneg %p1678_p11 }
 0x1f6   : > { %1815 = dma.done.wait (%p1679_p12), %s1407_s19, 2048  }
 0x1f7   : > { %1817 = vsyncadd (%p1679_p12), %s1407_s19, 4294965248  ;;  %s17_s22 = sadd.s32 1, %s1848_s22   ;;  %s2977_s15 = smov %s1824_s16 }
 0x1f8   : > { %p14_p13 = scmp.ge.s32.totalorder %s17_s22, 6   ;;  %s2978_s16 = smov %s1828_s17 }
 0x1f9   : > { %s2979_s17 = smov %s1946_s7  ;;  %s2980_s18 = smov %s1840_s20 }
 0x1fa   : > { %s2981_s19 = smov %s1844_s21  ;;  %s2982_s20 = smov %s2985_s25 }
 0x1fb   : > { %s2983_s21 = smov %s2989_s26  ;;  %16 = sbr.rel (!%p14_p13) target bundleno = 5 (0x5), region = 76 }
 0x200   :  { %1413 = vsyncpa [#allocation3], 1 }
 0x201   :  { %1415 = vsyncpa [#allocation3 + $0x1], 1 }

</bundles_post_ra>
